<compile_context>
chip_gen: v7x
topology: tpu7x:2x2x1
jax: 0.10.0
libtpu: 0.0.40
codegen_flags: <defaults>
</compile_context>

<pallas_src>
import jax
import jax.numpy as jnp
from jax.experimental import pallas as pl
from jax.experimental.pallas import tpu as pltpu

_VMEM = pl.BlockSpec(memory_space=pltpu.MemorySpace.VMEM)
_SMEM = pl.BlockSpec(memory_space=pltpu.MemorySpace.SMEM)

_BF16 = jnp.bfloat16
_F32 = jnp.float32


# ------------------------------ kernel helpers ------------------------------

def _gcn(adj_b, x_b, w_b, bias_f32):
    """relu((adj @ x) @ w + b); bf16 MXU operands, f32 accumulation."""
    support = jnp.dot(adj_b, x_b, preferred_element_type=_F32)
    out = jnp.dot(support.astype(_BF16), w_b,
                  preferred_element_type=_F32) + bias_f32
    return jnp.maximum(out, 0.0)


def _pool_select(h_f32, pw_row, pb, n_keep):
    """Pool scores + top-k selection, all in-register.

    Returns:
      S    (n_keep, n) bf16 : S[r, j] = 1 iff node j has descending-score rank r
      ST   (n, n_keep) bf16 : S^T, built independently (no transpose of S)
      vals (n_keep, 1) f32  : sigmoid score of the node selected for row r
    """
    n = h_f32.shape[0]
    logits = jnp.sum(h_f32 * pw_row, axis=-1, keepdims=True) + pb     # (n,1)
    scores = jax.nn.sigmoid(logits * 0.01)                            # (n,1) f32

    s_col = jnp.broadcast_to(scores, (n, n))                          # [i,j]=s[i]
    s_row = s_col.T                                                   # [i,j]=s[j]
    ri = jax.lax.broadcasted_iota(jnp.int32, (n, n), 0)
    ci = jax.lax.broadcasted_iota(jnp.int32, (n, n), 1)
    # "node i ranks ahead of node j" (ties broken by lower index, as in topk)
    ahead = (s_col > s_row) | ((s_col == s_row) & (ri < ci))
    # "node j ranks ahead of node i"
    beats = (s_row > s_col) | ((s_row == s_col) & (ci < ri))

    rank_row = jnp.sum(ahead.astype(_F32), axis=0,
                       keepdims=True).astype(jnp.int32)               # (1,n)
    rank_col = jnp.sum(beats.astype(_F32), axis=1,
                       keepdims=True).astype(jnp.int32)               # (n,1)

    r_iota = jax.lax.broadcasted_iota(jnp.int32, (n_keep, n), 0)
    k_iota = jax.lax.broadcasted_iota(jnp.int32, (n, n_keep), 1)
    sel = (rank_row == r_iota)                                        # (n_keep,n)
    S = sel.astype(_BF16)
    ST = (rank_col == k_iota).astype(_BF16)                           # (n,n_keep)

    # vals[r] = score of the selected node (f32, VPU mul + lane reduce)
    vals = jnp.sum(sel.astype(_F32) * s_row[:n_keep, :],
                   axis=1, keepdims=True)                             # (n_keep,1)
    return S, ST, vals


def _build_fused_kernel(l_n, keep_sizes):
    """Whole GraphUnet forward as one kernel body (all shapes static)."""

    def kernel(*refs):
        it = iter(refs)
        adj_ref, x_ref = next(it), next(it)
        start_w, start_b = next(it), next(it)
        downs = [(next(it), next(it), next(it)) for _ in range(l_n)]  # w, b, pw
        pool_b_ref = next(it)                                         # SMEM (l_n,)
        bottom_w, bottom_b = next(it), next(it)
        ups = [(next(it), next(it)) for _ in range(l_n)]
        end_w, end_b = next(it), next(it)
        out_x_ref, start_ref, gram_ref = next(it), next(it), next(it)

        A = adj_ref[...]                                              # (N,N) bf16

        # ---- start GCN ------------------------------------------------
        X = _gcn(A, x_ref[...], start_w[...], start_b[...])           # (N,dim) f32
        start_ref[...] = X
        org_b = X.astype(_BF16)

        # ---- down path: GCN -> pool score -> top-k select --------------
        adjs = [A]          # pre-pool adjacency per level (bf16)
        down_res = []       # f32 down-GCN outputs (residuals for the up path)
        unpools = []        # S^T per level (bf16) for the unpool scatter
        pool0 = None        # first pooled X (f32) for the gram output
        Xb = org_b
        for i in range(l_n):
            dw, db, pw = downs[i]
            H = _gcn(A, Xb, dw[...], db[...])                         # (n_i,dim) f32
            down_res.append(H)
            S, ST, vals = _pool_select(H, pw[...], pool_b_ref[i], keep_sizes[i])
            unpools.append(ST)
            # new_X = (S @ X) * values   (exact gather, then f32 scaling)
            Xp = jnp.dot(S, H.astype(_BF16), preferred_element_type=_F32) * vals
            if i == 0:
                pool0 = Xp
            # new_A = S @ A @ S^T  (NT dot_general, no explicit transpose)
            SA = jnp.dot(S, A, preferred_element_type=_F32).astype(_BF16)
            A = jax.lax.dot_general(SA, S, (((1,), (1,)), ((), ())),
                                    preferred_element_type=_F32).astype(_BF16)
            adjs.append(A)
            Xb = Xp.astype(_BF16)

        # ---- bottom GCN -------------------------------------------------
        X = _gcn(A, Xb, bottom_w[...], bottom_b[...])
        Xb = X.astype(_BF16)

        # ---- up path: unpool scatter -> GCN -> residual add -------------
        for i in range(l_n):
            up_idx = l_n - 1 - i
            A = adjs[up_idx]
            Xu = jnp.dot(unpools[up_idx], Xb,
                         preferred_element_type=_F32).astype(_BF16)   # S^T @ X
            uw, ub = ups[i]
            X = _gcn(A, Xu, uw[...], ub[...]) + down_res[up_idx]
            Xb = X.astype(_BF16)

        # ---- end GCN on the lane-concat [X, org_X] (K = 2*dim) -----------
        cat = jnp.concatenate([Xb, org_b], axis=1)                    # (N,2*dim) bf16
        support = jnp.dot(A, cat, preferred_element_type=_F32).astype(_BF16)
        out = jnp.dot(support, end_w[...],
                      preferred_element_type=_F32) + end_b[...]
        out_x_ref[...] = jnp.maximum(out, 0.0)

        # ---- gram of the first pooled X, unit diagonal --------------------
        p0 = pool0.astype(_BF16)
        g = jax.lax.dot_general(p0, p0, (((1,), (1,)), ((), ())),
                                preferred_element_type=_F32)
        k0 = keep_sizes[0]
        r = jax.lax.broadcasted_iota(jnp.int32, (k0, k0), 0)
        c = jax.lax.broadcasted_iota(jnp.int32, (k0, k0), 1)
        gram_ref[...] = jnp.where(r == c, jnp.float32(1.0), g)

    return kernel


# ------------------------------ forward wrapper ------------------------------

def graph_unet_forward(prep, A, X, ks):
    n = A.shape[0]
    l_n = len(ks)
    keep_sizes, cur = [], n
    for k in ks:
        cur = int(k * cur)
        keep_sizes.append(cur)

    dim = prep["start_w"].shape[1]
    out_dim = prep["end_w"].shape[1]

    args, specs = [], []

    def add(a, s=_VMEM):
        args.append(a)
        specs.append(s)

    # adjacency entries are small integers -> exact in bf16.
    add(A.astype(_BF16))
    add(X.astype(_BF16))
    add(prep["start_w"]); add(prep["start_b"])
    for i in range(l_n):
        add(prep["down_w"][i]); add(prep["down_b"][i]); add(prep["pool_w"][i])
    add(prep["pool_b"], _SMEM)
    add(prep["bottom_w"]); add(prep["bottom_b"])
    for i in range(l_n):
        add(prep["up_w"][i]); add(prep["up_b"][i])
    add(prep["end_w"]); add(prep["end_b"])

    out_shape = (jax.ShapeDtypeStruct((n, out_dim), _F32),
                 jax.ShapeDtypeStruct((n, dim), _F32),
                 jax.ShapeDtypeStruct((keep_sizes[0], keep_sizes[0]), _F32))

    return pl.pallas_call(
        _build_fused_kernel(l_n, tuple(keep_sizes)),
        out_shape=out_shape,
        in_specs=specs,
        out_specs=(_VMEM, _VMEM, _VMEM),
    )(*args)


# ----------------------------- params (init + prep) --------------------------

def xavier_uniform(key, shape):
    fan_in, fan_out = shape
    bound = (6.0 / (fan_in + fan_out)) ** 0.5
    return jax.random.uniform(key, shape, _F32, -bound, bound)


def init_params(key, ks, in_dim, out_dim, dim):
    l_n = len(ks)
    keys = jax.random.split(key, 3 + 3 * l_n)
    p = {
        "start_w": xavier_uniform(keys[0], (in_dim, dim)),
        "start_b": jnp.zeros((dim,), _F32),
        "bottom_w": xavier_uniform(keys[1], (dim, dim)),
        "bottom_b": jnp.zeros((dim,), _F32),
        "end_w": xavier_uniform(keys[2], (2 * dim, out_dim)),
        "end_b": jnp.zeros((out_dim,), _F32),
        "down_w": [], "down_b": [], "up_w": [], "up_b": [],
        "pool_w": [], "pool_b": [],
    }
    for i in range(l_n):
        kd, ku, kp = keys[3 + 3 * i], keys[4 + 3 * i], keys[5 + 3 * i]
        p["down_w"].append(xavier_uniform(kd, (dim, dim)))
        p["down_b"].append(jnp.zeros((dim,), _F32))
        p["up_w"].append(xavier_uniform(ku, (dim, dim)))
        p["up_b"].append(jnp.zeros((dim,), _F32))
        bound = 1.0 / (dim ** 0.5)
        p["pool_w"].append(jax.random.uniform(kp, (dim, 1), _F32, -bound, bound))
        p["pool_b"].append(jnp.zeros((1,), _F32))
    return p


def prep_params(p):
    """One-time cast/reshape so no convert/reshape HLOs surround the kernel."""
    return {
        "start_w": p["start_w"].astype(_BF16),
        "start_b": p["start_b"].reshape(1, -1).astype(_F32),
        "bottom_w": p["bottom_w"].astype(_BF16),
        "bottom_b": p["bottom_b"].reshape(1, -1).astype(_F32),
        "end_w": p["end_w"].astype(_BF16),
        "end_b": p["end_b"].reshape(1, -1).astype(_F32),
        "down_w": [w.astype(_BF16) for w in p["down_w"]],
        "down_b": [b.reshape(1, -1).astype(_F32) for b in p["down_b"]],
        "up_w": [w.astype(_BF16) for w in p["up_w"]],
        "up_b": [b.reshape(1, -1).astype(_F32) for b in p["up_b"]],
        "pool_w": [w.reshape(1, -1).astype(_F32) for w in p["pool_w"]],
        "pool_b": jnp.concatenate([b.reshape(1) for b in p["pool_b"]]).astype(_F32),
    }


# ---------------------------------- main -------------------------------------

if __name__ == "__main__":
    ks = [0.5, 0.5]
    n_nodes, in_dim, out_dim, dim = 16, 16, 16, 128

    key = jax.random.PRNGKey(0)
    k_a, k_x, k_p = jax.random.split(key, 3)

    # Synthetic symmetric adjacency with self-loops (entries 0/1/2 -> bf16-exact).
    A_raw = jax.random.uniform(k_a, (n_nodes, n_nodes), _F32)
    A = ((A_raw + A_raw.T) * 0.5 > 0.6).astype(_F32) + jnp.eye(n_nodes, dtype=_F32)
    X = jax.random.normal(k_x, (n_nodes, in_dim), _F32)

    params = init_params(k_p, ks, in_dim, out_dim, dim)
    prep = prep_params(params)

    fwd = jax.jit(lambda p, a, x: graph_unet_forward(p, a, x, ks))
    out_X, start_outs, pool_out = fwd(prep, A, X)
    jax.block_until_ready((out_X, start_outs, pool_out))

    assert out_X.shape == (n_nodes, out_dim)
    assert start_outs.shape == (n_nodes, dim)
    assert pool_out.shape == (int(ks[0] * n_nodes), int(ks[0] * n_nodes))
    assert bool(jnp.all(jnp.isfinite(out_X)))
    assert bool(jnp.all(jnp.isfinite(start_outs)))
    assert bool(jnp.all(jnp.isfinite(pool_out)))
    print("KERNEL_OK")
</pallas_src>

<mosaic_0001>
module attributes {stable_mosaic.version = 11 : i64} {
  func.func @kernel(%arg0: memref<16x16xbf16, #tpu.memory_space<vmem>>, %arg1: memref<16x16xbf16, #tpu.memory_space<vmem>>, %arg2: memref<16x128xbf16, #tpu.memory_space<vmem>>, %arg3: memref<1x128xf32, #tpu.memory_space<vmem>>, %arg4: memref<128x128xbf16, #tpu.memory_space<vmem>>, %arg5: memref<1x128xf32, #tpu.memory_space<vmem>>, %arg6: memref<1x128xf32, #tpu.memory_space<vmem>>, %arg7: memref<128x128xbf16, #tpu.memory_space<vmem>>, %arg8: memref<1x128xf32, #tpu.memory_space<vmem>>, %arg9: memref<1x128xf32, #tpu.memory_space<vmem>>, %arg10: memref<2xf32, #tpu.memory_space<smem>>, %arg11: memref<128x128xbf16, #tpu.memory_space<vmem>>, %arg12: memref<1x128xf32, #tpu.memory_space<vmem>>, %arg13: memref<128x128xbf16, #tpu.memory_space<vmem>>, %arg14: memref<1x128xf32, #tpu.memory_space<vmem>>, %arg15: memref<128x128xbf16, #tpu.memory_space<vmem>>, %arg16: memref<1x128xf32, #tpu.memory_space<vmem>>, %arg17: memref<256x16xbf16, #tpu.memory_space<vmem>>, %arg18: memref<1x16xf32, #tpu.memory_space<vmem>>, %arg19: memref<16x16xf32, #tpu.memory_space<vmem>>, %arg20: memref<16x128xf32, #tpu.memory_space<vmem>>, %arg21: memref<8x8xf32, #tpu.memory_space<vmem>>) attributes {dimension_semantics = [], scalar_prefetch = 0 : i64, scratch_operands = 0 : i64, tpu.core_type = #tpu.core_type<tc>} {
    %c0 = arith.constant 0 : index
    %c0_0 = arith.constant 0 : index
    %0 = vector.load %arg0[%c0, %c0_0] : memref<16x16xbf16, #tpu.memory_space<vmem>>, vector<16x16xbf16>
    %c0_1 = arith.constant 0 : index
    %c0_2 = arith.constant 0 : index
    %1 = vector.load %arg1[%c0_1, %c0_2] : memref<16x16xbf16, #tpu.memory_space<vmem>>, vector<16x16xbf16>
    %c0_3 = arith.constant 0 : index
    %c0_4 = arith.constant 0 : index
    %2 = vector.load %arg2[%c0_3, %c0_4] : memref<16x128xbf16, #tpu.memory_space<vmem>>, vector<16x128xbf16>
    %c0_5 = arith.constant 0 : index
    %c0_6 = arith.constant 0 : index
    %3 = vector.load %arg3[%c0_5, %c0_6] : memref<1x128xf32, #tpu.memory_space<vmem>>, vector<1x128xf32>
    %cst = arith.constant dense<0.000000e+00> : vector<16x16xf32>
    %4 = tpu.matmul %0, %1, %cst {dimension_numbers = #tpu.dot_dimension_numbers<[1], [0], [0], [1], [0, 0, 1, 1], [], []>} : vector<16x16xbf16>, vector<16x16xbf16>, vector<16x16xf32> -> vector<16x16xf32>
    %5 = arith.truncf %4 : vector<16x16xf32> to vector<16x16xbf16>
    %cst_7 = arith.constant dense<0.000000e+00> : vector<16x128xf32>
    %6 = tpu.matmul %5, %2, %cst_7 {dimension_numbers = #tpu.dot_dimension_numbers<[1], [0], [0], [1], [0, 0, 1, 1], [], []>} : vector<16x16xbf16>, vector<16x128xbf16>, vector<16x128xf32> -> vector<16x128xf32>
    %7 = vector.broadcast %3 : vector<1x128xf32> to vector<16x128xf32>
    %8 = arith.addf %6, %7 : vector<16x128xf32>
    %cst_8 = arith.constant 0.000000e+00 : f32
    %9 = vector.broadcast %cst_8 : f32 to vector<16x128xf32>
    %10 = arith.maximumf %8, %9 : vector<16x128xf32>
    %c0_9 = arith.constant 0 : index
    %c0_10 = arith.constant 0 : index
    %11 = vector.load %arg20[%c0_9, %c0_10] : memref<16x128xf32, #tpu.memory_space<vmem>>, vector<16x128xf32>
    tpu.vector_store %arg20[%c0_9, %c0_10], %10 {strides = array<i32>} : memref<16x128xf32, #tpu.memory_space<vmem>>, vector<16x128xf32>,
    %12 = arith.truncf %10 : vector<16x128xf32> to vector<16x128xbf16>
    %c0_11 = arith.constant 0 : index
    %c0_12 = arith.constant 0 : index
    %13 = vector.load %arg4[%c0_11, %c0_12] : memref<128x128xbf16, #tpu.memory_space<vmem>>, vector<128x128xbf16>
    %c0_13 = arith.constant 0 : index
    %c0_14 = arith.constant 0 : index
    %14 = vector.load %arg5[%c0_13, %c0_14] : memref<1x128xf32, #tpu.memory_space<vmem>>, vector<1x128xf32>
    %cst_15 = arith.constant dense<0.000000e+00> : vector<16x128xf32>
    %15 = tpu.matmul %0, %12, %cst_15 {dimension_numbers = #tpu.dot_dimension_numbers<[1], [0], [0], [1], [0, 0, 1, 1], [], []>} : vector<16x16xbf16>, vector<16x128xbf16>, vector<16x128xf32> -> vector<16x128xf32>
    %16 = arith.truncf %15 : vector<16x128xf32> to vector<16x128xbf16>
    %cst_16 = arith.constant dense<0.000000e+00> : vector<16x128xf32>
    %17 = tpu.matmul %16, %13, %cst_16 {dimension_numbers = #tpu.dot_dimension_numbers<[1], [0], [0], [1], [0, 0, 1, 1], [], []>} : vector<16x128xbf16>, vector<128x128xbf16>, vector<16x128xf32> -> vector<16x128xf32>
    %18 = vector.broadcast %14 : vector<1x128xf32> to vector<16x128xf32>
    %19 = arith.addf %17, %18 : vector<16x128xf32>
    %cst_17 = arith.constant 0.000000e+00 : f32
    %20 = vector.broadcast %cst_17 : f32 to vector<16x128xf32>
    %21 = arith.maximumf %19, %20 : vector<16x128xf32>
    %c0_18 = arith.constant 0 : index
    %c0_19 = arith.constant 0 : index
    %22 = vector.load %arg6[%c0_18, %c0_19] : memref<1x128xf32, #tpu.memory_space<vmem>>, vector<1x128xf32>
    %c0_20 = arith.constant 0 : index
    %23 = memref.load %arg10[%c0_20] : memref<2xf32, #tpu.memory_space<smem>>
    %24 = vector.broadcast %22 : vector<1x128xf32> to vector<16x128xf32>
    %25 = arith.mulf %21, %24 : vector<16x128xf32>
    %cst_21 = arith.constant dense<0.000000e+00> : vector<16xf32>
    %26 = vector.multi_reduction <add>, %25, %cst_21 [1] : vector<16x128xf32> to vector<16xf32>
    %27 = vector.shape_cast %26 : vector<16xf32> to vector<16x1xf32>
    %28 = vector.broadcast %23 : f32 to vector<16x1xf32>
    %29 = arith.addf %27, %28 : vector<16x1xf32>
    %cst_22 = arith.constant 0.00999999977 : f32
    %30 = vector.broadcast %cst_22 : f32 to vector<16x1xf32>
    %31 = arith.mulf %29, %30 : vector<16x1xf32>
    %32 = arith.negf %31 : vector<16x1xf32>
    %33 = math.exp %32 : vector<16x1xf32>
    %cst_23 = arith.constant 1.000000e+00 : f32
    %34 = vector.broadcast %cst_23 : f32 to vector<16x1xf32>
    %35 = arith.addf %34, %33 : vector<16x1xf32>
    %36 = arith.divf %34, %35 : vector<16x1xf32>
    %37 = vector.shape_cast %36 : vector<16x1xf32> to vector<16x1xf32>
    %38 = vector.broadcast %37 : vector<16x1xf32> to vector<16x16xf32>
    %39 = tpu.transpose %38, [1, 0] : vector<16x16xf32> -> vector<16x16xf32>
    %40 = tpu.iota {dimensions = array<i32: 0>} : vector<16x16xi32>
    %41 = tpu.iota {dimensions = array<i32: 1>} : vector<16x16xi32>
    %42 = arith.cmpf ogt, %38, %39 : vector<16x16xf32>
    %43 = arith.cmpf oeq, %38, %39 : vector<16x16xf32>
    %44 = arith.cmpi slt, %40, %41 : vector<16x16xi32>
    %45 = arith.andi %43, %44 : vector<16x16xi1>
    %46 = arith.ori %42, %45 : vector<16x16xi1>
    %47 = arith.cmpf ogt, %39, %38 : vector<16x16xf32>
    %48 = arith.cmpf oeq, %39, %38 : vector<16x16xf32>
    %49 = arith.cmpi slt, %41, %40 : vector<16x16xi32>
    %50 = arith.andi %48, %49 : vector<16x16xi1>
    %51 = arith.ori %47, %50 : vector<16x16xi1>
    %52 = arith.extui %46 : vector<16x16xi1> to vector<16x16xi32>
    %53 = arith.sitofp %52 : vector<16x16xi32> to vector<16x16xf32>
    %cst_24 = arith.constant dense<0.000000e+00> : vector<16xf32>
    %54 = vector.multi_reduction <add>, %53, %cst_24 [0] : vector<16x16xf32> to vector<16xf32>
    %55 = vector.shape_cast %54 : vector<16xf32> to vector<1x16xf32>
    %56 = arith.fptosi %55 : vector<1x16xf32> to vector<1x16xi32>
    %57 = arith.extui %51 : vector<16x16xi1> to vector<16x16xi32>
    %58 = arith.sitofp %57 : vector<16x16xi32> to vector<16x16xf32>
    %cst_25 = arith.constant dense<0.000000e+00> : vector<16xf32>
    %59 = vector.multi_reduction <add>, %58, %cst_25 [1] : vector<16x16xf32> to vector<16xf32>
    %60 = vector.shape_cast %59 : vector<16xf32> to vector<16x1xf32>
    %61 = arith.fptosi %60 : vector<16x1xf32> to vector<16x1xi32>
    %62 = tpu.iota {dimensions = array<i32: 0>} : vector<8x16xi32>
    %63 = tpu.iota {dimensions = array<i32: 1>} : vector<16x8xi32>
    %64 = vector.broadcast %56 : vector<1x16xi32> to vector<8x16xi32>
    %65 = arith.cmpi eq, %64, %62 : vector<8x16xi32>
    %66 = arith.extui %65 : vector<8x16xi1> to vector<8x16xi32>
    %67 = arith.sitofp %66 : vector<8x16xi32> to vector<8x16xf32>
    %68 = arith.truncf %67 : vector<8x16xf32> to vector<8x16xbf16>
    %69 = vector.broadcast %61 : vector<16x1xi32> to vector<16x8xi32>
    %70 = arith.cmpi eq, %69, %63 : vector<16x8xi32>
    %71 = arith.extui %70 : vector<16x8xi1> to vector<16x8xi32>
    %72 = arith.sitofp %71 : vector<16x8xi32> to vector<16x8xf32>
    %73 = arith.truncf %72 : vector<16x8xf32> to vector<16x8xbf16>
    %74 = arith.extui %65 : vector<8x16xi1> to vector<8x16xi32>
    %75 = arith.sitofp %74 : vector<8x16xi32> to vector<8x16xf32>
    %76 = vector.extract_strided_slice %39 {offsets = [0, 0], sizes = [8, 16], strides = [1, 1]} : vector<16x16xf32> to vector<8x16xf32>
    %77 = arith.mulf %75, %76 : vector<8x16xf32>
    %cst_26 = arith.constant dense<0.000000e+00> : vector<8xf32>
    %78 = vector.multi_reduction <add>, %77, %cst_26 [1] : vector<8x16xf32> to vector<8xf32>
    %79 = vector.shape_cast %78 : vector<8xf32> to vector<8x1xf32>
    %80 = arith.truncf %21 : vector<16x128xf32> to vector<16x128xbf16>
    %cst_27 = arith.constant dense<0.000000e+00> : vector<8x128xf32>
    %81 = tpu.matmul %68, %80, %cst_27 {dimension_numbers = #tpu.dot_dimension_numbers<[1], [0], [0], [1], [0, 0, 1, 1], [], []>} : vector<8x16xbf16>, vector<16x128xbf16>, vector<8x128xf32> -> vector<8x128xf32>
    %82 = vector.broadcast %79 : vector<8x1xf32> to vector<8x128xf32>
    %83 = arith.mulf %81, %82 : vector<8x128xf32>
    %cst_28 = arith.constant dense<0.000000e+00> : vector<8x16xf32>
    %84 = tpu.matmul %68, %0, %cst_28 {dimension_numbers = #tpu.dot_dimension_numbers<[1], [0], [0], [1], [0, 0, 1, 1], [], []>} : vector<8x16xbf16>, vector<16x16xbf16>, vector<8x16xf32> -> vector<8x16xf32>
    %85 = arith.truncf %84 : vector<8x16xf32> to vector<8x16xbf16>
    %cst_29 = arith.constant dense<0.000000e+00> : vector<8x8xf32>
    %86 = tpu.matmul %85, %68, %cst_29 {dimension_numbers = #tpu.dot_dimension_numbers<[1], [1], [0], [0], [0, 0, 1, 0], [], []>} : vector<8x16xbf16>, vector<8x16xbf16>, vector<8x8xf32> -> vector<8x8xf32>
    %87 = arith.truncf %86 : vector<8x8xf32> to vector<8x8xbf16>
    %88 = arith.truncf %83 : vector<8x128xf32> to vector<8x128xbf16>
    %c0_30 = arith.constant 0 : index
    %c0_31 = arith.constant 0 : index
    %89 = vector.load %arg7[%c0_30, %c0_31] : memref<128x128xbf16, #tpu.memory_space<vmem>>, vector<128x128xbf16>
    %c0_32 = arith.constant 0 : index
    %c0_33 = arith.constant 0 : index
    %90 = vector.load %arg8[%c0_32, %c0_33] : memref<1x128xf32, #tpu.memory_space<vmem>>, vector<1x128xf32>
    %cst_34 = arith.constant dense<0.000000e+00> : vector<8x128xf32>
    %91 = tpu.matmul %87, %88, %cst_34 {dimension_numbers = #tpu.dot_dimension_numbers<[1], [0], [0], [1], [0, 0, 1, 1], [], []>} : vector<8x8xbf16>, vector<8x128xbf16>, vector<8x128xf32> -> vector<8x128xf32>
    %92 = arith.truncf %91 : vector<8x128xf32> to vector<8x128xbf16>
    %cst_35 = arith.constant dense<0.000000e+00> : vector<8x128xf32>
    %93 = tpu.matmul %92, %89, %cst_35 {dimension_numbers = #tpu.dot_dimension_numbers<[1], [0], [0], [1], [0, 0, 1, 1], [], []>} : vector<8x128xbf16>, vector<128x128xbf16>, vector<8x128xf32> -> vector<8x128xf32>
    %94 = vector.broadcast %90 : vector<1x128xf32> to vector<8x128xf32>
    %95 = arith.addf %93, %94 : vector<8x128xf32>
    %cst_36 = arith.constant 0.000000e+00 : f32
    %96 = vector.broadcast %cst_36 : f32 to vector<8x128xf32>
    %97 = arith.maximumf %95, %96 : vector<8x128xf32>
    %c0_37 = arith.constant 0 : index
    %c0_38 = arith.constant 0 : index
    %98 = vector.load %arg9[%c0_37, %c0_38] : memref<1x128xf32, #tpu.memory_space<vmem>>, vector<1x128xf32>
    %c1 = arith.constant 1 : index
    %99 = memref.load %arg10[%c1] : memref<2xf32, #tpu.memory_space<smem>>
    %100 = vector.broadcast %98 : vector<1x128xf32> to vector<8x128xf32>
    %101 = arith.mulf %97, %100 : vector<8x128xf32>
    %cst_39 = arith.constant dense<0.000000e+00> : vector<8xf32>
    %102 = vector.multi_reduction <add>, %101, %cst_39 [1] : vector<8x128xf32> to vector<8xf32>
    %103 = vector.shape_cast %102 : vector<8xf32> to vector<8x1xf32>
    %104 = vector.broadcast %99 : f32 to vector<8x1xf32>
    %105 = arith.addf %103, %104 : vector<8x1xf32>
    %cst_40 = arith.constant 0.00999999977 : f32
    %106 = vector.broadcast %cst_40 : f32 to vector<8x1xf32>
    %107 = arith.mulf %105, %106 : vector<8x1xf32>
    %108 = arith.negf %107 : vector<8x1xf32>
    %109 = math.exp %108 : vector<8x1xf32>
    %cst_41 = arith.constant 1.000000e+00 : f32
    %110 = vector.broadcast %cst_41 : f32 to vector<8x1xf32>
    %111 = arith.addf %110, %109 : vector<8x1xf32>
    %112 = arith.divf %110, %111 : vector<8x1xf32>
    %113 = vector.shape_cast %112 : vector<8x1xf32> to vector<8x1xf32>
    %114 = vector.broadcast %113 : vector<8x1xf32> to vector<8x8xf32>
    %115 = tpu.transpose %114, [1, 0] : vector<8x8xf32> -> vector<8x8xf32>
    %116 = tpu.iota {dimensions = array<i32: 0>} : vector<8x8xi32>
    %117 = tpu.iota {dimensions = array<i32: 1>} : vector<8x8xi32>
    %118 = arith.cmpf ogt, %114, %115 : vector<8x8xf32>
    %119 = arith.cmpf oeq, %114, %115 : vector<8x8xf32>
    %120 = arith.cmpi slt, %116, %117 : vector<8x8xi32>
    %121 = arith.andi %119, %120 : vector<8x8xi1>
    %122 = arith.ori %118, %121 : vector<8x8xi1>
    %123 = arith.cmpf ogt, %115, %114 : vector<8x8xf32>
    %124 = arith.cmpf oeq, %115, %114 : vector<8x8xf32>
    %125 = arith.cmpi slt, %117, %116 : vector<8x8xi32>
    %126 = arith.andi %124, %125 : vector<8x8xi1>
    %127 = arith.ori %123, %126 : vector<8x8xi1>
    %128 = arith.extui %122 : vector<8x8xi1> to vector<8x8xi32>
    %129 = arith.sitofp %128 : vector<8x8xi32> to vector<8x8xf32>
    %cst_42 = arith.constant dense<0.000000e+00> : vector<8xf32>
    %130 = vector.multi_reduction <add>, %129, %cst_42 [0] : vector<8x8xf32> to vector<8xf32>
    %131 = vector.shape_cast %130 : vector<8xf32> to vector<1x8xf32>
    %132 = arith.fptosi %131 : vector<1x8xf32> to vector<1x8xi32>
    %133 = arith.extui %127 : vector<8x8xi1> to vector<8x8xi32>
    %134 = arith.sitofp %133 : vector<8x8xi32> to vector<8x8xf32>
    %cst_43 = arith.constant dense<0.000000e+00> : vector<8xf32>
    %135 = vector.multi_reduction <add>, %134, %cst_43 [1] : vector<8x8xf32> to vector<8xf32>
    %136 = vector.shape_cast %135 : vector<8xf32> to vector<8x1xf32>
    %137 = arith.fptosi %136 : vector<8x1xf32> to vector<8x1xi32>
    %138 = tpu.iota {dimensions = array<i32: 0>} : vector<4x8xi32>
    %139 = tpu.iota {dimensions = array<i32: 1>} : vector<8x4xi32>
    %140 = vector.broadcast %132 : vector<1x8xi32> to vector<4x8xi32>
    %141 = arith.cmpi eq, %140, %138 : vector<4x8xi32>
    %142 = arith.extui %141 : vector<4x8xi1> to vector<4x8xi32>
    %143 = arith.sitofp %142 : vector<4x8xi32> to vector<4x8xf32>
    %144 = arith.truncf %143 : vector<4x8xf32> to vector<4x8xbf16>
    %145 = vector.broadcast %137 : vector<8x1xi32> to vector<8x4xi32>
    %146 = arith.cmpi eq, %145, %139 : vector<8x4xi32>
    %147 = arith.extui %146 : vector<8x4xi1> to vector<8x4xi32>
    %148 = arith.sitofp %147 : vector<8x4xi32> to vector<8x4xf32>
    %149 = arith.truncf %148 : vector<8x4xf32> to vector<8x4xbf16>
    %150 = arith.extui %141 : vector<4x8xi1> to vector<4x8xi32>
    %151 = arith.sitofp %150 : vector<4x8xi32> to vector<4x8xf32>
    %152 = vector.extract_strided_slice %115 {offsets = [0, 0], sizes = [4, 8], strides = [1, 1]} : vector<8x8xf32> to vector<4x8xf32>
    %153 = arith.mulf %151, %152 : vector<4x8xf32>
    %cst_44 = arith.constant dense<0.000000e+00> : vector<4xf32>
    %154 = vector.multi_reduction <add>, %153, %cst_44 [1] : vector<4x8xf32> to vector<4xf32>
    %155 = vector.shape_cast %154 : vector<4xf32> to vector<4x1xf32>
    %156 = arith.truncf %97 : vector<8x128xf32> to vector<8x128xbf16>
    %cst_45 = arith.constant dense<0.000000e+00> : vector<4x128xf32>
    %157 = tpu.matmul %144, %156, %cst_45 {dimension_numbers = #tpu.dot_dimension_numbers<[1], [0], [0], [1], [0, 0, 1, 1], [], []>} : vector<4x8xbf16>, vector<8x128xbf16>, vector<4x128xf32> -> vector<4x128xf32>
    %158 = vector.broadcast %155 : vector<4x1xf32> to vector<4x128xf32>
    %159 = arith.mulf %157, %158 : vector<4x128xf32>
    %cst_46 = arith.constant dense<0.000000e+00> : vector<4x8xf32>
    %160 = tpu.matmul %144, %87, %cst_46 {dimension_numbers = #tpu.dot_dimension_numbers<[1], [0], [0], [1], [0, 0, 1, 1], [], []>} : vector<4x8xbf16>, vector<8x8xbf16>, vector<4x8xf32> -> vector<4x8xf32>
    %161 = arith.truncf %160 : vector<4x8xf32> to vector<4x8xbf16>
    %cst_47 = arith.constant dense<0.000000e+00> : vector<4x4xf32>
    %162 = tpu.matmul %161, %144, %cst_47 {dimension_numbers = #tpu.dot_dimension_numbers<[1], [1], [0], [0], [0, 0, 1, 0], [], []>} : vector<4x8xbf16>, vector<4x8xbf16>, vector<4x4xf32> -> vector<4x4xf32>
    %163 = arith.truncf %162 : vector<4x4xf32> to vector<4x4xbf16>
    %164 = arith.truncf %159 : vector<4x128xf32> to vector<4x128xbf16>
    %c0_48 = arith.constant 0 : index
    %c0_49 = arith.constant 0 : index
    %165 = vector.load %arg11[%c0_48, %c0_49] : memref<128x128xbf16, #tpu.memory_space<vmem>>, vector<128x128xbf16>
    %c0_50 = arith.constant 0 : index
    %c0_51 = arith.constant 0 : index
    %166 = vector.load %arg12[%c0_50, %c0_51] : memref<1x128xf32, #tpu.memory_space<vmem>>, vector<1x128xf32>
    %cst_52 = arith.constant dense<0.000000e+00> : vector<4x128xf32>
    %167 = tpu.matmul %163, %164, %cst_52 {dimension_numbers = #tpu.dot_dimension_numbers<[1], [0], [0], [1], [0, 0, 1, 1], [], []>} : vector<4x4xbf16>, vector<4x128xbf16>, vector<4x128xf32> -> vector<4x128xf32>
    %168 = arith.truncf %167 : vector<4x128xf32> to vector<4x128xbf16>
    %cst_53 = arith.constant dense<0.000000e+00> : vector<4x128xf32>
    %169 = tpu.matmul %168, %165, %cst_53 {dimension_numbers = #tpu.dot_dimension_numbers<[1], [0], [0], [1], [0, 0, 1, 1], [], []>} : vector<4x128xbf16>, vector<128x128xbf16>, vector<4x128xf32> -> vector<4x128xf32>
    %170 = vector.broadcast %166 : vector<1x128xf32> to vector<4x128xf32>
    %171 = arith.addf %169, %170 : vector<4x128xf32>
    %cst_54 = arith.constant 0.000000e+00 : f32
    %172 = vector.broadcast %cst_54 : f32 to vector<4x128xf32>
    %173 = arith.maximumf %171, %172 : vector<4x128xf32>
    %174 = arith.truncf %173 : vector<4x128xf32> to vector<4x128xbf16>
    %cst_55 = arith.constant dense<0.000000e+00> : vector<8x128xf32>
    %175 = tpu.matmul %149, %174, %cst_55 {dimension_numbers = #tpu.dot_dimension_numbers<[1], [0], [0], [1], [0, 0, 1, 1], [], []>} : vector<8x4xbf16>, vector<4x128xbf16>, vector<8x128xf32> -> vector<8x128xf32>
    %176 = arith.truncf %175 : vector<8x128xf32> to vector<8x128xbf16>
    %c0_56 = arith.constant 0 : index
    %c0_57 = arith.constant 0 : index
    %177 = vector.load %arg13[%c0_56, %c0_57] : memref<128x128xbf16, #tpu.memory_space<vmem>>, vector<128x128xbf16>
    %c0_58 = arith.constant 0 : index
    %c0_59 = arith.constant 0 : index
    %178 = vector.load %arg14[%c0_58, %c0_59] : memref<1x128xf32, #tpu.memory_space<vmem>>, vector<1x128xf32>
    %cst_60 = arith.constant dense<0.000000e+00> : vector<8x128xf32>
    %179 = tpu.matmul %87, %176, %cst_60 {dimension_numbers = #tpu.dot_dimension_numbers<[1], [0], [0], [1], [0, 0, 1, 1], [], []>} : vector<8x8xbf16>, vector<8x128xbf16>, vector<8x128xf32> -> vector<8x128xf32>
    %180 = arith.truncf %179 : vector<8x128xf32> to vector<8x128xbf16>
    %cst_61 = arith.constant dense<0.000000e+00> : vector<8x128xf32>
    %181 = tpu.matmul %180, %177, %cst_61 {dimension_numbers = #tpu.dot_dimension_numbers<[1], [0], [0], [1], [0, 0, 1, 1], [], []>} : vector<8x128xbf16>, vector<128x128xbf16>, vector<8x128xf32> -> vector<8x128xf32>
    %182 = vector.broadcast %178 : vector<1x128xf32> to vector<8x128xf32>
    %183 = arith.addf %181, %182 : vector<8x128xf32>
    %cst_62 = arith.constant 0.000000e+00 : f32
    %184 = vector.broadcast %cst_62 : f32 to vector<8x128xf32>
    %185 = arith.maximumf %183, %184 : vector<8x128xf32>
    %186 = arith.addf %185, %97 : vector<8x128xf32>
    %187 = arith.truncf %186 : vector<8x128xf32> to vector<8x128xbf16>
    %cst_63 = arith.constant dense<0.000000e+00> : vector<16x128xf32>
    %188 = tpu.matmul %73, %187, %cst_63 {dimension_numbers = #tpu.dot_dimension_numbers<[1], [0], [0], [1], [0, 0, 1, 1], [], []>} : vector<16x8xbf16>, vector<8x128xbf16>, vector<16x128xf32> -> vector<16x128xf32>
    %189 = arith.truncf %188 : vector<16x128xf32> to vector<16x128xbf16>
    %c0_64 = arith.constant 0 : index
    %c0_65 = arith.constant 0 : index
    %190 = vector.load %arg15[%c0_64, %c0_65] : memref<128x128xbf16, #tpu.memory_space<vmem>>, vector<128x128xbf16>
    %c0_66 = arith.constant 0 : index
    %c0_67 = arith.constant 0 : index
    %191 = vector.load %arg16[%c0_66, %c0_67] : memref<1x128xf32, #tpu.memory_space<vmem>>, vector<1x128xf32>
    %cst_68 = arith.constant dense<0.000000e+00> : vector<16x128xf32>
    %192 = tpu.matmul %0, %189, %cst_68 {dimension_numbers = #tpu.dot_dimension_numbers<[1], [0], [0], [1], [0, 0, 1, 1], [], []>} : vector<16x16xbf16>, vector<16x128xbf16>, vector<16x128xf32> -> vector<16x128xf32>
    %193 = arith.truncf %192 : vector<16x128xf32> to vector<16x128xbf16>
    %cst_69 = arith.constant dense<0.000000e+00> : vector<16x128xf32>
    %194 = tpu.matmul %193, %190, %cst_69 {dimension_numbers = #tpu.dot_dimension_numbers<[1], [0], [0], [1], [0, 0, 1, 1], [], []>} : vector<16x128xbf16>, vector<128x128xbf16>, vector<16x128xf32> -> vector<16x128xf32>
    %195 = vector.broadcast %191 : vector<1x128xf32> to vector<16x128xf32>
    %196 = arith.addf %194, %195 : vector<16x128xf32>
    %cst_70 = arith.constant 0.000000e+00 : f32
    %197 = vector.broadcast %cst_70 : f32 to vector<16x128xf32>
    %198 = arith.maximumf %196, %197 : vector<16x128xf32>
    %199 = arith.addf %198, %21 : vector<16x128xf32>
    %200 = arith.truncf %199 : vector<16x128xf32> to vector<16x128xbf16>
    %201 = tpu.concatenate %200, %12 in 1 : vector<16x128xbf16>, vector<16x128xbf16> -> vector<16x256xbf16>
    %cst_71 = arith.constant dense<0.000000e+00> : vector<16x256xf32>
    %202 = tpu.matmul %0, %201, %cst_71 {dimension_numbers = #tpu.dot_dimension_numbers<[1], [0], [0], [1], [0, 0, 1, 1], [], []>} : vector<16x16xbf16>, vector<16x256xbf16>, vector<16x256xf32> -> vector<16x256xf32>
    %203 = arith.truncf %202 : vector<16x256xf32> to vector<16x256xbf16>
    %c0_72 = arith.constant 0 : index
    %c0_73 = arith.constant 0 : index
    %204 = vector.load %arg17[%c0_72, %c0_73] : memref<256x16xbf16, #tpu.memory_space<vmem>>, vector<256x16xbf16>
    %cst_74 = arith.constant dense<0.000000e+00> : vector<16x16xf32>
    %205 = tpu.matmul %203, %204, %cst_74 {dimension_numbers = #tpu.dot_dimension_numbers<[1], [0], [0], [1], [0, 0, 1, 1], [], []>} : vector<16x256xbf16>, vector<256x16xbf16>, vector<16x16xf32> -> vector<16x16xf32>
    %c0_75 = arith.constant 0 : index
    %c0_76 = arith.constant 0 : index
    %206 = vector.load %arg18[%c0_75, %c0_76] : memref<1x16xf32, #tpu.memory_space<vmem>>, vector<1x16xf32>
    %207 = vector.broadcast %206 : vector<1x16xf32> to vector<16x16xf32>
    %208 = arith.addf %205, %207 : vector<16x16xf32>
    %cst_77 = arith.constant 0.000000e+00 : f32
    %209 = vector.broadcast %cst_77 : f32 to vector<16x16xf32>
    %210 = arith.maximumf %208, %209 : vector<16x16xf32>
    %c0_78 = arith.constant 0 : index
    %c0_79 = arith.constant 0 : index
    %211 = vector.load %arg19[%c0_78, %c0_79] : memref<16x16xf32, #tpu.memory_space<vmem>>, vector<16x16xf32>
    tpu.vector_store %arg19[%c0_78, %c0_79], %210 {strides = array<i32>} : memref<16x16xf32, #tpu.memory_space<vmem>>, vector<16x16xf32>,
    %212 = arith.truncf %83 : vector<8x128xf32> to vector<8x128xbf16>
    %cst_80 = arith.constant dense<0.000000e+00> : vector<8x8xf32>
    %213 = tpu.matmul %212, %212, %cst_80 {dimension_numbers = #tpu.dot_dimension_numbers<[1], [1], [0], [0], [0, 0, 1, 0], [], []>} : vector<8x128xbf16>, vector<8x128xbf16>, vector<8x8xf32> -> vector<8x8xf32>
    %214 = tpu.iota {dimensions = array<i32: 0>} : vector<8x8xi32>
    %215 = tpu.iota {dimensions = array<i32: 1>} : vector<8x8xi32>
    %216 = arith.cmpi eq, %214, %215 : vector<8x8xi32>
    %cst_81 = arith.constant 1.000000e+00 : f32
    %217 = vector.broadcast %cst_81 : f32 to vector<8x8xf32>
    %218 = arith.select %216, %217, %213 : vector<8x8xi1>, vector<8x8xf32>
    %c0_82 = arith.constant 0 : index
    %c0_83 = arith.constant 0 : index
    %219 = vector.load %arg21[%c0_82, %c0_83] : memref<8x8xf32, #tpu.memory_space<vmem>>, vector<8x8xf32>
    tpu.vector_store %arg21[%c0_82, %c0_83], %218 {strides = array<i32>} : memref<8x8xf32, #tpu.memory_space<vmem>>, vector<8x8xf32>,
    return
  }
}

</mosaic_0001>

<bundles_post_ra>
// kernel: _lambda_.1
= control target key start
LH: loop header
LB: loop body
LE: loop exit
PB: predicated region body
PF: predicated region fallthrough
CT: control target
= control target key end

     0   :  { %s3524_s0 = inlined_call_operand.vmem [shape: bf16[16,16], index: 0, kind: input, shape index: {}]   ;;  %s3525_s1 = inlined_call_operand.vmem [shape: bf16[16,16], index: 1, kind: input, shape index: {}]   ;;  %s3526_s2 = inlined_call_operand.hbm [shape: bf16[16,128], index: 2, kind: input, shape index: {}]   ;;  %s3527_s3 = inlined_call_operand.vmem [shape: f32[1,128], index: 3, kind: input, shape index: {}]   ;;  %s3528_s4 = inlined_call_operand.vmem [shape: bf16[128,128], index: 4, kind: input, shape index: {}]   ;;  %s3529_s5 = inlined_call_operand.hbm [shape: f32[1,128], index: 5, kind: input, shape index: {}]   ;;  %s3530_s6 = inlined_call_operand.hbm [shape: f32[1,128], index: 6, kind: input, shape index: {}]   ;;  %s3531_s7 = inlined_call_operand.vmem [shape: bf16[128,128], index: 7, kind: input, shape index: {}]   ;;  %s3532_s8 = inlined_call_operand.hbm [shape: f32[1,128], index: 8, kind: input, shape index: {}]   ;;  %s3533_s9 = inlined_call_operand.hbm [shape: f32[1,128], index: 9, kind: input, shape index: {}]   ;;  %s3534_s10 = inlined_call_operand.hbm [shape: f32[2], index: 10, kind: input, shape index: {}]   ;;  %s3535_s11 = inlined_call_operand.vmem [shape: bf16[128,128], index: 11, kind: input, shape index: {}]   ;;  %s3536_s12 = inlined_call_operand.hbm [shape: f32[1,128], index: 12, kind: input, shape index: {}]   ;;  %s3537_s13 = inlined_call_operand.hbm [shape: bf16[128,128], index: 13, kind: input, shape index: {}]   ;;  %s3538_s14 = inlined_call_operand.hbm [shape: f32[1,128], index: 14, kind: input, shape index: {}]   ;;  %s3539_s15 = inlined_call_operand.hbm [shape: bf16[128,128], index: 15, kind: input, shape index: {}]   ;;  %s3540_s16 = inlined_call_operand.vmem [shape: f32[1,128], index: 16, kind: input, shape index: {}]   ;;  %s3541_s17 = inlined_call_operand.vmem [shape: bf16[256,16], index: 17, kind: input, shape index: {}]   ;;  %s3542_s18 = inlined_call_operand.hbm [shape: f32[1,16], index: 18, kind: input, shape index: {}]   ;;  %s3543_s19 = inlined_call_operand.hbm [shape: f32[16,16], index: 19, kind: output, shape index: {0}]   ;;  %s3544_s20 = inlined_call_operand.hbm [shape: f32[16,128], index: 20, kind: output, shape index: {1}]   ;;  %s3545_s21 = inlined_call_operand.hbm [shape: f32[8,8], index: 21, kind: output, shape index: {2}]  }
   0x1   :  { %3550 = sst [smem:[#allocation34_spill]] %s3524_s0 }
   0x2   :  { %3551 = sst [smem:[#allocation35_spill]] %s3525_s1 }
   0x3   :  { %3552 = sst [smem:[#allocation36_spill]] %s3526_s2 }
   0x4   :  { %3553 = sst [smem:[#allocation37_spill]] %s3527_s3 }
   0x5   :  { %3554 = sst [smem:[#allocation38_spill]] %s3528_s4 }
   0x6   :  { %3555 = sst [smem:[#allocation39_spill]] %s3529_s5 }
   0x7   :  { %27 = vsyncpa [#allocation3], 0 }
   0x8   :  { %28 = vsyncpa [#allocation7], 0 }
   0x9   :  { %29 = vsyncpa [#allocation10], 0 }
   0xa   :  { %30 = vsyncpa [#allocation5], 0 }
   0xb   :  { %31 = vsyncpa [#allocation14], 0 }
   0xc   :  { %32 = vsyncpa [#allocation17], 0 }
   0xd   :  { %33 = vsyncpa [#allocation20], 0 }
   0xe   :  { %34 = vsyncpa [#allocation4], 0 }
   0xf   :  { %35 = vsyncpa [#allocation23], 0  ;;  %s2834_s2 = smov [#allocation6]   ;;  %s2835_s26 = smov [#allocation9]  }
  0x10   :  { %s62_s25 = sshll.u32 %s2834_s2, 4  ;;  %s84_s27 = sshll.u32 %s2835_s26, 4  ;;  %s63_s25 = int_to_ptr.vmem [resolvable:$true] %s62_s25  ;;  %s85_s27 = int_to_ptr.vmem [resolvable:$true] %s84_s27 }
  0x11   :  { %s3556_s29 = sld [smem:[#allocation39_spill]] }
  0x17   :  { %s2520_s0 = scalar_lea.hbm %s3556_s29, 16 }
  0x18   :  { %p2521_p0 = scmp.ne.s32.totalorder %s3556_s29, %s2520_s0  ;;  %p2524_p1 = scmp.lt.u32.totalorder %s2520_s0, %s3556_s29 }
  0x1a   :  { %p2526_p2 = pnand %p2524_p1, %p2521_p0 }
  0x1c   :  { %2529 = shalt.err (!%p2526_p2)
}
  0x1d   :  { %s2530_s23 = scalar_lea.vmem %s63_s25, 16  ;;  %s2534_s1 = scalar_lea.vmem %s63_s25, 32 }
  0x1e   :  { %p2531_p3 = scmp.ne.s32.totalorder %s63_s25, %s2530_s23  ;;  %p2535_p4 = scmp.lt.s32.totalorder %s63_s25, %s63_s25 }
  0x1f   :  { %p2536_p5 = scmp.lt.s32.totalorder %s2534_s1, %s2530_s23 }
  0x21   :  { %p2537_p6 = por %p2536_p5, %p2535_p4 }
  0x23   :  { %p2538_p7 = pnand %p2537_p6, %p2531_p3 }
  0x25   :  { %2541 = shalt.err (!%p2538_p7)
}
  0x26   :  { %65 = dma.hbm_to_vmem [thread:$0]  %s3556_s29, 16, %s63_s25, [#allocation7]  }
  0x27   :  { %s2542_s28 = scalar_lea.hbm %s3532_s8, 16 }
  0x28   :  { %p2543_p8 = scmp.ne.s32.totalorder %s3532_s8, %s2542_s28  ;;  %p2546_p9 = scmp.lt.u32.totalorder %s2542_s28, %s3532_s8 }
  0x2a   :  { %p2548_p10 = pnand %p2546_p9, %p2543_p8 }
  0x2c   :  { %2551 = shalt.err (!%p2548_p10)
}
  0x2d   :  { %s2552_s22 = scalar_lea.vmem %s85_s27, 16  ;;  %s2556_s23 = scalar_lea.vmem %s85_s27, 32 }
  0x2e   :  { %p2553_p11 = scmp.ne.s32.totalorder %s85_s27, %s2552_s22  ;;  %p2557_p12 = scmp.lt.s32.totalorder %s85_s27, %s85_s27 }
  0x2f   :  { %p2558_p13 = scmp.lt.s32.totalorder %s2556_s23, %s2552_s22 }
  0x31   :  { %p2559_p0 = por %p2558_p13, %p2557_p12 }
  0x33   :  { %p2560_p1 = pnand %p2559_p0, %p2553_p11 }
  0x35   :  { %2563 = shalt.err (!%p2560_p1)
}
  0x36   :  { %87 = dma.hbm_to_vmem [thread:$0]  %s3532_s8, 16, %s85_s27, [#allocation10]  }
  0x37   :  { %s2836_s1 = smov [#allocation13]   ;;  %s2837_s2 = smov [#allocation16]  }
  0x38   :  { %s114_s24 = sshll.u32 %s2836_s1, 4  ;;  %s136_s26 = sshll.u32 %s2837_s2, 4  ;;  %s115_s24 = int_to_ptr.vmem [resolvable:$true] %s114_s24  ;;  %s137_s26 = int_to_ptr.vmem [resolvable:$true] %s136_s26 }
  0x39   :  { %s2564_s4 = scalar_lea.hbm %s3536_s12, 16 }
  0x3a   :  { %p2565_p2 = scmp.ne.s32.totalorder %s3536_s12, %s2564_s4  ;;  %p2568_p3 = scmp.lt.u32.totalorder %s2564_s4, %s3536_s12 }
  0x3c   :  { %p2570_p4 = pnand %p2568_p3, %p2565_p2 }
  0x3e   :  { %2573 = shalt.err (!%p2570_p4)
}
  0x3f   :  { %s2574_s8 = scalar_lea.vmem %s115_s24, 16  ;;  %s2578_s27 = scalar_lea.vmem %s115_s24, 32 }
  0x40   :  { %p2575_p5 = scmp.ne.s32.totalorder %s115_s24, %s2574_s8  ;;  %p2579_p6 = scmp.lt.s32.totalorder %s115_s24, %s115_s24 }
  0x41   :  { %p2580_p7 = scmp.lt.s32.totalorder %s2578_s27, %s2574_s8 }
  0x43   :  { %p2581_p8 = por %p2580_p7, %p2579_p6 }
  0x45   :  { %p2582_p9 = pnand %p2581_p8, %p2575_p5 }
  0x47   :  { %2585 = shalt.err (!%p2582_p9)
}
  0x48   :  { %117 = dma.hbm_to_vmem [thread:$0]  %s3536_s12, 16, %s115_s24, [#allocation14]  }
  0x49   :  { %s2586_s2 = scalar_lea.hbm %s3538_s14, 16 }
  0x4a   :  { %p2587_p10 = scmp.ne.s32.totalorder %s3538_s14, %s2586_s2  ;;  %p2590_p11 = scmp.lt.u32.totalorder %s2586_s2, %s3538_s14 }
  0x4c   :  { %p2592_p12 = pnand %p2590_p11, %p2587_p10 }
  0x4e   :  { %2595 = shalt.err (!%p2592_p12)
}
  0x4f   :  { %s2596_s30 = scalar_lea.vmem %s137_s26, 16  ;;  %s2600_s5 = scalar_lea.vmem %s137_s26, 32 }
  0x50   :  { %p2597_p13 = scmp.ne.s32.totalorder %s137_s26, %s2596_s30  ;;  %p2601_p0 = scmp.lt.s32.totalorder %s137_s26, %s137_s26 }
  0x51   :  { %p2602_p1 = scmp.lt.s32.totalorder %s2600_s5, %s2596_s30 }
  0x53   :  { %p2603_p2 = por %p2602_p1, %p2601_p0 }
  0x55   :  { %p2604_p3 = pnand %p2603_p2, %p2597_p13 }
  0x57   :  { %2607 = shalt.err (!%p2604_p3)
}
  0x58   :  { %139 = dma.hbm_to_vmem [thread:$0]  %s3538_s14, 16, %s137_s26, [#allocation17]  }
  0x59   :  { %s2838_s22 = smov [#allocation2]   ;;  %s3557_s25 = sld [smem:[#allocation36_spill]] }
  0x5a   :  { %s45_s8 = sshll.u32 %s2838_s22, 4  ;;  %s46_s8 = int_to_ptr.vmem [resolvable:$true] %s45_s8 }
  0x5f   :  { %s2608_s29 = scalar_lea.hbm %s3557_s25, 128 }
  0x60   :  { %p2609_p4 = scmp.ne.s32.totalorder %s3557_s25, %s2608_s29  ;;  %p2612_p5 = scmp.lt.u32.totalorder %s2608_s29, %s3557_s25 }
  0x62   :  { %p2614_p6 = pnand %p2612_p5, %p2609_p4 }
  0x64   :  { %2617 = shalt.err (!%p2614_p6)
}
  0x65   :  { %s2618_s4 = scalar_lea.vmem %s46_s8, 128  ;;  %p2623_p8 = scmp.lt.s32.totalorder %s46_s8, %s46_s8 }
  0x66   :  { %p2619_p7 = scmp.ne.s32.totalorder %s46_s8, %s2618_s4  ;;  %p2624_p9 = scmp.lt.s32.totalorder %s2618_s4, %s2618_s4 }
  0x68   :  { %p2625_p10 = por %p2624_p9, %p2623_p8 }
  0x6a   :  { %p2626_p11 = pnand %p2625_p10, %p2619_p7 }
  0x6c   :  { %2629 = shalt.err (!%p2626_p11)
}
  0x6d   :  { %s2839_s14 = smov 64   ;;  %s2840_s26 = smov 4  }
  0x6e   :  { %51 = dma.hbm_to_vmem [thread:$0]  %s3557_s25, 128, %s46_s8, [#allocation3], %s2839_s14, %s2839_s14, %s2840_s26  }
  0x6f   :  { %s2841_s5 = smov [#allocation8]   ;;  %s2842_s24 = smov [#allocation11]  }
  0x70   :  { %s72_s12 = sshll.u32 %s2841_s5, 4  ;;  %s94_s22 = sshll.u32 %s2842_s24, 4  ;;  %s73_s12 = int_to_ptr.vmem [resolvable:$true] %s72_s12  ;;  %s95_s22 = int_to_ptr.vmem [resolvable:$true] %s94_s22 }
  0x71   :  { %s2630_s29 = scalar_lea.hbm %s3530_s6, 16 }
  0x72   :  { %p2631_p12 = scmp.ne.s32.totalorder %s3530_s6, %s2630_s29  ;;  %p2634_p13 = scmp.lt.u32.totalorder %s2630_s29, %s3530_s6 }
  0x74   :  { %p2636_p0 = pnand %p2634_p13, %p2631_p12 }
  0x76   :  { %2639 = shalt.err (!%p2636_p0)
}
  0x77   :  { %s2640_s8 = scalar_lea.vmem %s73_s12, 16  ;;  %s2644_s25 = scalar_lea.vmem %s73_s12, 32 }
  0x78   :  { %p2641_p1 = scmp.ne.s32.totalorder %s73_s12, %s2640_s8  ;;  %p2645_p2 = scmp.lt.s32.totalorder %s73_s12, %s73_s12 }
  0x79   :  { %p2646_p3 = scmp.lt.s32.totalorder %s2644_s25, %s2640_s8 }
  0x7b   :  { %p2647_p4 = por %p2646_p3, %p2645_p2 }
  0x7d   :  { %p2648_p5 = pnand %p2647_p4, %p2641_p1 }
  0x7f   :  { %2651 = shalt.err (!%p2648_p5)
}
  0x80   :  { %75 = dma.hbm_to_vmem [thread:$0]  %s3530_s6, 16, %s73_s12, [#allocation7]  }
  0x81   :  { %s2652_s24 = scalar_lea.hbm %s3533_s9, 16 }
  0x82   :  { %p2653_p6 = scmp.ne.s32.totalorder %s3533_s9, %s2652_s24  ;;  %p2656_p7 = scmp.lt.u32.totalorder %s2652_s24, %s3533_s9 }
  0x84   :  { %p2658_p8 = pnand %p2656_p7, %p2653_p6 }
  0x86   :  { %2661 = shalt.err (!%p2658_p8)
}
  0x87   :  { %s2662_s2 = scalar_lea.vmem %s95_s22, 16  ;;  %s2666_s3 = scalar_lea.vmem %s95_s22, 32 }
  0x88   :  { %p2663_p9 = scmp.ne.s32.totalorder %s95_s22, %s2662_s2  ;;  %p2667_p10 = scmp.lt.s32.totalorder %s95_s22, %s95_s22 }
  0x89   :  { %p2668_p11 = scmp.lt.s32.totalorder %s2666_s3, %s2662_s2 }
  0x8b   :  { %p2669_p12 = por %p2668_p11, %p2667_p10 }
  0x8d   :  { %p2670_p13 = pnand %p2669_p12, %p2663_p9 }
  0x8f   :  { %2673 = shalt.err (!%p2670_p13)
}
  0x90   :  { %97 = dma.hbm_to_vmem [thread:$0]  %s3533_s9, 16, %s95_s22, [#allocation10]  }
  0x91   :  { %s2674_s25 = scalar_lea.hbm %s3534_s10, 16 }
  0x92   :  { %p2675_p0 = scmp.ne.s32.totalorder %s3534_s10, %s2674_s25  ;;  %p2678_p1 = scmp.lt.u32.totalorder %s2674_s25, %s3534_s10 }
  0x94   :  { %p2680_p2 = pnand %p2678_p1, %p2675_p0 }
  0x96   :  { %2683 = shalt.err (!%p2680_p2)
}
  0x97   :  { %s2843_s24 = smov [#allocation12]   ;;  %s2844_s9 = smov [#allocation15]  }
  0x98   :  { %105 = dma.hbm_to_smem %s3534_s10, 16, %s2843_s24, [#allocation5]  }
  0x99   :  { %s123_s22 = sshll.u32 %s2844_s9, 4  ;;  %s2845_s29 = smov [#allocation18]   ;;  %s124_s22 = int_to_ptr.vmem [resolvable:$true] %s123_s22 }
  0x9a   :  { %s145_s1 = sshll.u32 %s2845_s29, 4  ;;  %s2684_s6 = scalar_lea.hbm %s3537_s13, 1024  ;;  %s3064_s1 = int_to_ptr.vmem [resolvable:$true] %s145_s1 }
  0x9b   :  { %p2685_p3 = scmp.ne.s32.totalorder %s3537_s13, %s2684_s6  ;;  %p2688_p4 = scmp.lt.u32.totalorder %s2684_s6, %s3537_s13 }
  0x9d   :  { %p2690_p5 = pnand %p2688_p4, %p2685_p3 }
  0x9f   :  { %2693 = shalt.err (!%p2690_p5)
}
  0xa0   :  { %s2694_s10 = scalar_lea.vmem %s124_s22, 1024  ;;  %p2699_p7 = scmp.lt.s32.totalorder %s124_s22, %s124_s22 }
  0xa1   :  { %p2695_p6 = scmp.ne.s32.totalorder %s124_s22, %s2694_s10  ;;  %p2700_p8 = scmp.lt.s32.totalorder %s2694_s10, %s2694_s10 }
  0xa3   :  { %p2701_p9 = por %p2700_p8, %p2699_p7 }
  0xa5   :  { %p2702_p10 = pnand %p2701_p9, %p2695_p6 }
  0xa7   :  { %2705 = shalt.err (!%p2702_p10)
}
  0xa8   :  { %129 = dma.hbm_to_vmem [thread:$0]  %s3537_s13, 1024, %s124_s22, [#allocation14], %s2839_s14, %s2839_s14, %s2840_s26  }
  0xa9   :  { %s2706_s24 = scalar_lea.hbm %s3539_s15, 1024 }
  0xaa   :  { %p2707_p11 = scmp.ne.s32.totalorder %s3539_s15, %s2706_s24  ;;  %p2710_p12 = scmp.lt.u32.totalorder %s2706_s24, %s3539_s15 }
  0xac   :  { %p2712_p13 = pnand %p2710_p12, %p2707_p11 }
  0xae   :  { %2715 = shalt.err (!%p2712_p13)
}
  0xaf   :  { %s2716_s2 = scalar_lea.vmem %s3064_s1, 1024  ;;  %p2721_p1 = scmp.lt.s32.totalorder %s3064_s1, %s3064_s1 }
  0xb0   :  { %p2717_p0 = scmp.ne.s32.totalorder %s3064_s1, %s2716_s2  ;;  %p2722_p2 = scmp.lt.s32.totalorder %s2716_s2, %s2716_s2 }
  0xb2   :  { %p2723_p3 = por %p2722_p2, %p2721_p1 }
  0xb4   :  { %p2724_p4 = pnand %p2723_p3, %p2717_p0 }
  0xb6   :  { %2727 = shalt.err (!%p2724_p4)
}
  0xb7   :  { %151 = dma.hbm_to_vmem [thread:$0]  %s3539_s15, 1024, %s3064_s1, [#allocation17], %s2839_s14, %s2839_s14, %s2840_s26  }
  0xb8   :  { %s2846_s3 = smov [#allocation19]   ;;  %s2728_s8 = scalar_lea.hbm %s3542_s18, 16 }
  0xb9   :  { %s162_s6 = sshll.u32 %s2846_s3, 4  ;;  %p2729_p5 = scmp.ne.s32.totalorder %s3542_s18, %s2728_s8  ;;  %s163_s6 = int_to_ptr.vmem [resolvable:$true] %s162_s6 }
  0xba   :  { %p2732_p6 = scmp.lt.u32.totalorder %s2728_s8, %s3542_s18 }
  0xbc   :  { %p2734_p7 = pnand %p2732_p6, %p2729_p5 }
  0xbe   :  { %2737 = shalt.err (!%p2734_p7)
}
  0xbf   :  { %s2738_s30 = scalar_lea.vmem %s163_s6, 16  ;;  %s2742_s15 = scalar_lea.vmem %s163_s6, 32 }
  0xc0   :  { %p2739_p8 = scmp.ne.s32.totalorder %s163_s6, %s2738_s30  ;;  %p2743_p9 = scmp.lt.s32.totalorder %s163_s6, %s163_s6 }
  0xc1   :  { %p2744_p10 = scmp.lt.s32.totalorder %s2742_s15, %s2738_s30 }
  0xc3   :  { %p2745_p11 = por %p2744_p10, %p2743_p9 }
  0xc5   :  { %p2746_p12 = pnand %p2745_p11, %p2739_p8 }
  0xc7   :  { %2749 = shalt.err (!%p2746_p12)
}
  0xc8   :  { %165 = dma.hbm_to_vmem [thread:$0]  %s3542_s18, 16, %s163_s6, [#allocation20]  }
  0xc9   :  { %2816 = dma.done.wait [#allocation3], 128  }
  0xca   :  { %2817 = vsyncadd [#allocation3], 4294967168 }
  0xcb   :  { %2818 = dma.done.wait [#allocation7], 32  }
  0xcc   :  { %2819 = vsyncadd [#allocation7], 4294967264 }
  0xcd   :  { %2820 = dma.done.wait [#allocation10], 32  }
  0xce   :  { %2821 = vsyncadd [#allocation10], 4294967264 }
  0xcf   :  { %2822 = dma.done.wait [#allocation5], 16  }
  0xd0   :  { %2823 = vsyncadd [#allocation5], 4294967280 }
  0xd1   :  { %2824 = dma.done.wait [#allocation14], 1040  }
  0xd2   :  { %2825 = vsyncadd [#allocation14], 4294966256 }
  0xd3   :  { %2826 = dma.done.wait [#allocation17], 1040  }
  0xd4   :  { %2827 = vsyncadd [#allocation17], 4294966256 }
  0xd5   :  { %2828 = dma.done.wait [#allocation20], 16  }
  0xd6   :  { %2829 = vsyncadd [#allocation20], 4294967280 }
  0xd7   :  { %199 = sfence }
  0xd8   :  { %s3558_s24 = sld [smem:[#allocation35_spill]]  ;;  %v2847_v1 = vmov 0.0   ;;  %s3559_s23 = sld [smem:[#allocation34_spill]]  ;;  %vm2848_vm0 = vmmov 0   ;;  %vm219_vm1 = vcmask 130048   ;;  %v2450_v3 = vld [vmem:[#allocation2] sm:$0xff]   ;;  %v545_v60 = vlaneseq }
  0xd9   :  { %2221 = vmatprep.subr.bf16.mxu0 %v2847_v1  ;;  %2227 = vmatprep.subr.bf16.mxu1 %v2847_v1  ;;  %s3560_s2 = sld [smem:[#allocation38_spill]]  ;;  %s3561_s26 = sld [smem:[#allocation37_spill]]  ;;  %v2030_v32 = vld [vmem:[#allocation6] ss:$0 sm:$0xff]  ;;  %v2039_v37 = vld [vmem:[#allocation8] ss:$0 sm:$0xff] }
  0xda   :  { %2223 = vmatprep.mubr.msk.bf16.mxu0 %vm2848_vm0, %v2847_v1  ;;  %2229 = vmatprep.mubr.msk.bf16.mxu1 %vm2848_vm0, %v2847_v1  ;;  %v3196_v61 = vshrl.u32 %v545_v60, 7  ;;  %v3198_v62 = vand.u32 127, %v545_v60  ;;  %vm764_vm13 = vcmask 1043456   ;;  %vm760_vm14 = vcmask 64512   ;;  %s2850_s0 = smov [#allocation22]  }
  0xdb   :  { %2228 = vmatpush3.bf16.msra.mxu1 %v2450_v3 }
  0xdc   :  { %2239 = vmatprep.subr.bf16.mxu1 %v2847_v1  ;;  %vm554_vm2 = vcmp.lt.s32.totalorder %v3196_v61, %v3198_v62  ;;  %v3203_v63 = vadd.s32 8, %v3196_v61 }
  0xde   :  { %v2448_v0 = vld [vmem:[%s3558_s24] sm:$0xff]   ;;  %s483_s24 = sld [smem:[#allocation12]]  ;;  %vm555_vm7 = vcmp.lt.s32.totalorder %v3203_v63, %v3198_v62 }
  0xdf   :  { %v3120_v2 = vld [vmem:[%s3559_s23] sm:$0xff]   ;;  %2222 = vmatpush3.bf16.msra.mxu0 %v2448_v0  ;;  %v2452_v10 = vld [vmem:[%s3560_s2 + $0x8] sm:$0xff]   ;;  %v2453_v11 = vld [vmem:[%s3560_s2 + $0x10] sm:$0xff]  }
  0xe0   :  { %2233 = vmatprep.subr.bf16.mxu0 %v2847_v1  ;;  %v2451_v9 = vld [vmem:[%s3560_s2] sm:$0xff]   ;;  %v2454_v12 = vld [vmem:[%s3560_s2 + $0x18] sm:$0xff]   ;;  %v2456_v14 = vld [vmem:[%s3560_s2 + $0x28] sm:$0xff]  }
  0xe1   :  { %v2455_v13 = vld [vmem:[%s3560_s2 + $0x20] sm:$0xff]   ;;  %v2457_v15 = vld [vmem:[%s3560_s2 + $0x30] sm:$0xff]   ;;  %v2458_v26 = vld [vmem:[%s3560_s2 + $0x38] sm:$0xff]  }
  0xe2   :  { %2224 = vmatmul.mubr.msk.bf16.vlgmr.msra.gmra.mrb[0].mxu0 %vm219_vm1, %v3120_v2  ;;  %v2026_v16 = vld [vmem:[%s3561_s26] ss:$0 sm:$0xff] }
  0xe3   :  { %2235 = vmatprep.mubr.msk.bf16.mxu0 %vm2848_vm0, %v2847_v1 }
  0xe4   :  { %v496_v45 = vstv %s483_s24 }
 0x1b5   :  { %v257_v4 = vpop.f32.mrb[0].mxu0 }
 0x1b6   :  { %v2225_v5 = vpop.f32.mrb[1].mxu0 }
 0x1b7   :  { %v260_v6 = vpop.f32.mrb[2].mxu0 }
 0x1b8   :  { %v264_v7 = vpack.c.bf16 %v260_v6, %v257_v4  ;;  %v2226_v8 = vpop.f32.mrb[3].mxu0 }
 0x1ba   :  { %2230 = vmatmul.mubr.msk.bf16.vlgmr.msra.gmra.mrb[0].mxu1 %vm219_vm1, %v264_v7 }
 0x1bb   :  { %2255 = vmatprep.mubr.msk.bf16.mxu1 %vm2848_vm0, %v2847_v1  ;;  %2240 = vmatpush3.bf16.msra.mxu1 %v2451_v9 }
 0x1bc   :  { %2241 = vmatprep.subr.bf16.mxu1 %v2847_v1 }
 0x1bf   :  { %2242 = vmatpush3.bf16.msra.mxu1 %v2452_v10 }
 0x1c0   :  { %2243 = vmatprep.subr.bf16.mxu1 %v2847_v1 }
 0x1c3   :  { %2244 = vmatpush3.bf16.msra.mxu1 %v2453_v11 }
 0x1c4   :  { %2245 = vmatprep.subr.bf16.mxu1 %v2847_v1 }
 0x1c7   :  { %2246 = vmatpush3.bf16.msra.mxu1 %v2454_v12 }
 0x1c8   :  { %2247 = vmatprep.subr.bf16.mxu1 %v2847_v1 }
 0x1cb   :  { %2248 = vmatpush3.bf16.msra.mxu1 %v2455_v13 }
 0x1cc   :  { %2249 = vmatprep.subr.bf16.mxu1 %v2847_v1 }
 0x1cf   :  { %2250 = vmatpush3.bf16.msra.mxu1 %v2456_v14 }
 0x1d0   :  { %2251 = vmatprep.subr.bf16.mxu1 %v2847_v1 }
 0x1d3   :  { %2252 = vmatpush3.bf16.msra.mxu1 %v2457_v15 }
 0x1d4   :  { %2253 = vmatprep.subr.bf16.mxu1 %v2847_v1 }
 0x1d7   :  { %2254 = vmatpush3.bf16.msra.mxu1 %v2458_v26 }
 0x1d8   :  { %2283 = vmatprep.subr.bf16.mxu1 %v2847_v1 }
 0x28d   :  { %v314_v17 = vpop.f32.mrb[0].mxu1 }
 0x28e   :  { %v315_v18 = vadd.f32 %v2026_v16, %v314_v17  ;;  %v2231_v19 = vpop.f32.mrb[1].mxu1 }
 0x28f   :  { %v317_v20 = vpop.f32.mrb[2].mxu1 }
 0x290   :  { %v321_v21 = vmax.f32 %v315_v18, 0.0  ;;  %v318_v22 = vadd.f32 %v2026_v16, %v317_v20  ;;  %v2232_v23 = vpop.f32.mrb[3].mxu1 }
 0x292   :  { %323 = vst [vmem:[#allocation22] sm:$0xff] %v321_v21  ;;  %v322_v24 = vmax.f32 %v318_v22, 0.0 }
 0x294   :  { %324 = vst [vmem:[#allocation22 + $0x8] sm:$0xff] %v322_v24  ;;  %v3167_v25 = vpack.c.bf16 %v322_v24, %v321_v21 }
 0x296   :  { %2234 = vmatpush3.bf16.msra.mxu0 %v3167_v25 }
 0x297   :  { %2259 = vmatprep.subr.bf16.mxu0 %v2847_v1 }
 0x299   :  { %2236 = vmatmul.mubr.msk.bf16.vlgmr.msra.gmra.mrb[4].mxu0 %vm219_vm1, %v3120_v2 }
 0x29a   :  { %2261 = vmatprep.mubr.msk.bf16.mxu0 %vm2848_vm0, %v2847_v1 }
 0x36c   :  { %v377_v27 = vpop.f32.mrb[4].mxu0 }
 0x36d   :  { %v2237_v28 = vpop.f32.mrb[5].mxu0 }
 0x36e   :  { %v380_v29 = vpop.f32.mrb[6].mxu0 }
 0x36f   :  { %v384_v30 = vpack.c.bf16 %v380_v29, %v377_v27  ;;  %v2238_v31 = vpop.f32.mrb[7].mxu0 }
 0x371   :  { %2256 = vmatmul.mubr.bf16.vlgmr.msra.gmra.mrb[4].mxu1 %v384_v30 }
 0x372   :  { %2299 = vmatprep.mubr.msk.bf16.mxu1 %vm2848_vm0, %v2847_v1 }
 0x444   :  { %v473_v33 = vpop.f32.mrb[4].mxu1 }
 0x445   :  { %v474_v34 = vadd.f32 %v2030_v32, %v473_v33  ;;  %v2257_v35 = vpop.f32.mrb[5].mxu1 }
 0x446   :  { %v476_v36 = vpop.f32.mrb[6].mxu1  ;;  %v2459_v35 = vld [vmem:[%s3531_s7] sm:$0xff]  }
 0x447   :  { %v3181_v38 = vmax.f32 %v474_v34, 0.0  ;;  %v477_v39 = vadd.f32 %v2030_v32, %v476_v36  ;;  %v2258_v40 = vpop.f32.mrb[7].mxu1  ;;  %2284 = vmatpush3.bf16.msra.mxu1 %v2459_v35  ;;  %v2460_v36 = vld [vmem:[%s3531_s7 + $0x8] sm:$0xff]  }
 0x448   :  { %2285 = vmatprep.subr.bf16.mxu1 %v2847_v1  ;;  %v2463_v40 = vld [vmem:[%s3531_s7 + $0x20] sm:$0xff]  }
 0x449   :  { %v3183_v41 = vmax.f32 %v477_v39, 0.0  ;;  %v490_v42 = vmul.f32 %v2039_v37, %v3181_v38  ;;  %v2462_v39 = vld [vmem:[%s3531_s7 + $0x18] sm:$0xff]  }
 0x44b   :  { %v611_v43 = vpack.c.bf16 %v3183_v41, %v3181_v38  ;;  %492 = vadd.xlane.f32.xlu0 %v490_v42  ;;  %v491_v44 = vmul.f32 %v2039_v37, %v3183_v41  ;;  %2286 = vmatpush3.bf16.msra.mxu1 %v2460_v36  ;;  %v2461_v37 = vld [vmem:[%s3531_s7 + $0x10] sm:$0xff]   ;;  %v2464_v42 = vld [vmem:[%s3531_s7 + $0x28] sm:$0xff]  }
 0x44c   :  { %2287 = vmatprep.subr.bf16.mxu1 %v2847_v1 }
 0x44d   :  { %2260 = vmatpush3.bf16.msra.mxu0 %v611_v43  ;;  %v2465_v43 = vld [vmem:[%s3531_s7 + $0x30] sm:$0xff]  }
 0x44e   :  { %2265 = vmatprep.subr.bf16.mxu0 %v2847_v1 }
 0x44f   :  { %494 = vadd.xlane.f32.xlu0 %v491_v44  ;;  %2288 = vmatpush3.bf16.msra.mxu1 %v2461_v37 }
 0x450   :  { %2289 = vmatprep.subr.bf16.mxu1 %v2847_v1 }
 0x453   :  { %2290 = vmatpush3.bf16.msra.mxu1 %v2462_v39 }
 0x454   :  { %2291 = vmatprep.subr.bf16.mxu1 %v2847_v1 }
 0x457   :  { %2292 = vmatpush3.bf16.msra.mxu1 %v2463_v40 }
 0x458   :  { %2293 = vmatprep.subr.bf16.mxu1 %v2847_v1 }
 0x45b   :  { %2294 = vmatpush3.bf16.msra.mxu1 %v2464_v42 }
 0x45c   :  { %2295 = vmatprep.subr.bf16.mxu1 %v2847_v1 }
 0x45f   :  { %2296 = vmatpush3.bf16.msra.mxu1 %v2465_v43 }
 0x460   :  { %2297 = vmatprep.subr.bf16.mxu1 %v2847_v1 }
 0x4d8   :  { %v493_v46 = vpop.xlane.xlu0 %492 }
 0x4d9   :  { %v497_v47 = vadd.f32 %v496_v45, %v493_v46 }
 0x4db   :  { %v2040_v48 = vmul.f32 -0.01, %v497_v47 }
 0x4dc   :  { %v495_v49 = vpop.xlane.xlu0 %494 }
 0x4dd   :  { %v503_v50 = vmul.f32 1.442695, %v2040_v48  ;;  %v498_v51 = vadd.f32 %v496_v45, %v495_v49  ;;  %v2466_v49 = vld [vmem:[%s3531_s7 + $0x38] sm:$0xff]   ;;  %s2062_s7 = sld [smem:[#allocation12 + $0x1]] }
 0x4de   :  { %2298 = vmatpush3.bf16.msra.mxu1 %v2466_v49 }
 0x4df   :  { %2507 = vpow2.f32 %v503_v50  ;;  %v2041_v52 = vmul.f32 -0.01, %v498_v51  ;;  %2327 = vmatprep.subr.bf16.mxu1 %v2847_v1 }
 0x4e1   :  { %v505_v53 = vmul.f32 1.442695, %v2041_v52 }
 0x4e3   :  { %2509 = vpow2.f32 %v505_v53 }
 0x4e9   :  { %v2508_v54 = vpop.eup %2507 }
 0x4ea   :  { %v507_v55 = vadd.f32 1.0, %v2508_v54 }
 0x4ec   :  { %2511 = vrcp.f32 %v507_v55  ;;  %v2053_v55 = vld [vmem:[#allocation9] ss:$0 sm:$0xff] }
 0x4ed   :  { %v2510_v56 = vpop.eup %2509 }
 0x4ee   :  { %v508_v57 = vadd.f32 1.0, %v2510_v56 }
 0x4f0   :  { %2513 = vrcp.f32 %v508_v57 }
 0x4f6   :  { %v3190_v58 = vpop.eup %2511 }
 0x4f7   :  { %513 = vxpose.xlu1.b32.start [1/2] (short) (narrow) %v3190_v58, 16 }
 0x4fa   :  { %v3193_v59 = vpop.eup %2513 }
 0x4fb   :  { %514 = vxpose.xlu1.b32.end [2/2] (short) (narrow) %v3193_v59, 16 }
 0x577   :  { %v3205_v0 = vpop.trf.xlu1 }
 0x578   :  { %vm550_vm3 = vcmp.gt.f32.partialorder %v3190_v58, %v3205_v0  ;;  %vm552_vm4 = vcmp.eq.f32.partialorder %v3190_v58, %v3205_v0 }
 0x579   :  { %vm556_vm5 = vmand %vm552_vm4, %vm554_vm2 }
 0x57a   :  { %vm558_vm6 = vmor %vm550_vm3, %vm556_vm5  ;;  %vm565_vm3 = vcmp.lt.s32.totalorder %v3198_v62, %v3203_v63 }
 0x57b   :  { %v3216_v3 = vpop.trf.xlu1  ;;  %v2042_v4 = vsel %vm558_vm6, 1.0, %v2847_v1 }
 0x57c   :  { %vm551_vm8 = vcmp.gt.f32.partialorder %v3193_v59, %v3216_v3  ;;  %vm553_vm9 = vcmp.eq.f32.partialorder %v3193_v59, %v3216_v3  ;;  %v574_v6 = vsel %vm219_vm1, %v2042_v4, 0.0  ;;  %vm563_vm15 = vcmp.eq.f32.partialorder %v3216_v3, %v3193_v59 }
 0x57d   :  { %vm557_vm10 = vmand %vm553_vm9, %vm555_vm7  ;;  %vm561_vm4 = vcmp.gt.f32.partialorder %v3216_v3, %v3193_v59 }
 0x57e   :  { %vm559_vm11 = vmor %vm551_vm8, %vm557_vm10 }
 0x57f   :  { %v2043_v5 = vsel %vm559_vm11, 1.0, %v2847_v1  ;;  %vm567_vm5 = vmand %vm563_vm15, %vm565_vm3 }
 0x580   :  { %v575_v7 = vsel %vm219_vm1, %v2043_v5, 0.0  ;;  %v2063_v5 = vld [vmem:[#allocation11] ss:$0 sm:$0xff]  ;;  %vm569_vm6 = vmor %vm561_vm4, %vm567_vm5  ;;  %vm562_vm4 = vcmp.eq.f32.partialorder %v3205_v0, %v3190_v58  ;;  %vm989_vm5 = vcmask 60416  }
 0x581   :  { %v576_v8 = vadd.f32 %v575_v7, %v574_v6 }
 0x583   :  { %v577_v9 = vrot.slane %v576_v8, 4 }
 0x585   :  { %v578_v10 = vadd.f32 %v577_v9, %v576_v8 }
 0x587   :  { %v579_v11 = vrot.slane %v578_v10, 2 }
 0x589   :  { %v580_v12 = vadd.f32 %v579_v11, %v578_v10  ;;  %v915_v11 = vstv %s2062_s7  ;;  %s1988_s7 = sshll.u32 %s2850_s0, 4  ;;  %s1989_s7 = int_to_ptr.vmem [resolvable:$true] %s1988_s7 }
 0x58a   :  { %s2750_s30 = scalar_lea.vmem %s1989_s7, 256  ;;  %p2755_p0 = scmp.lt.s32.totalorder %s1989_s7, %s1989_s7 }
 0x58b   :  { %v581_v13 = vrot.slane %v580_v12, 1  ;;  %p2751_p13 = scmp.ne.s32.totalorder %s1989_s7, %s2750_s30  ;;  %p2756_p1 = scmp.lt.s32.totalorder %s2750_s30, %s2750_s30 }
 0x58d   :  { %v582_v14 = vadd.f32 %v581_v13, %v580_v12  ;;  %p2757_p2 = por %p2756_p1, %p2755_p0 }
 0x58f   :  { %v2417_v15 = vtrunc.f32 %v582_v14  ;;  %p2758_p3 = pnand %p2757_p2, %p2751_p13 }
 0x591   :  { %v2418_v16 = vcvt.f32.s32 %v2417_v15 }
 0x593   :  { %vm596_vm12 = vcmp.eq.s32.totalorder %v2418_v16, %v3196_v61 }
 0x594   :  { %v2046_v17 = vsel %vm596_vm12, 1.0, %v2847_v1  ;;  %vm564_vm12 = vcmp.lt.s32.totalorder %v3198_v62, %v3196_v61 }
 0x595   :  { %v599_v18 = vpack.c.bf16 %v2046_v17, %v2046_v17  ;;  %v607_v19 = vmul.f32 %v2046_v17, %v3205_v0 }
 0x597   :  { %2262 = vmatmul.mubr.msk.bf16.vlgmr.msra.gmra.mrb[8].mxu0 %vm219_vm1, %v599_v18  ;;  %v608_v20 = vsel %vm219_vm1, %v607_v19, 0.0  ;;  %v613_v21 = vsel %vm219_vm1, %v599_v18, 0  ;;  %v2045_v19 = vsel %vm569_vm6, 1.0, %v2847_v1 }
 0x598   :  { %2266 = vmatpush3.bf16.msra.mxu0 %v3120_v2  ;;  %609 = vadd.xlane.f32.xlu0 %v608_v20  ;;  %v591_v20 = vsel %vm219_vm1, %v2045_v19, 0.0 }
 0x599   :  { %2267 = vmatprep.mubr.msk.bf16.mxu0 %vm2848_vm0, %v2847_v1  ;;  %2271 = vmatprep.subr.bf16.mxu0 %v2847_v1 }
 0x59f   :  { %2268 = vmatmul.mubr.msk.bf16.vlgmr.msra.gmra.mrb[12].mxu0 %vm219_vm1, %v599_v18 }
 0x5a0   :  { %2273 = vmatprep.mubr.msk.bf16.mxu0 %vm2848_vm0, %v2847_v1 }
 0x5a1   :  { %2272 = vmatpush3.bf16.xpose.msra.mxu0 %v613_v21 }
 0x5a2   :  { %2277 = vmatprep.subr.bf16.mxu0 %v2847_v1 }
 0x625   :  { %v610_v24 = vpop.xlane.xlu0 %609 }
 0x66a   :  { %v649_v22 = vpop.f32.mrb[8].mxu0 }
 0x66b   :  { %v2263_v23 = vpop.f32.mrb[9].mxu0  ;;  %v655_v26 = vmul.f32 %v649_v22, %v610_v24 }
 0x66c   :  { %v652_v2 = vpop.f32.mrb[10].mxu0 }
 0x66d   :  { %v2264_v27 = vpop.f32.mrb[11].mxu0  ;;  %v3240_v28 = vpack.c.bf16 %v655_v26, %v655_v26 }
 0x66f   :  { %v766_v34 = vsel %vm764_vm13, %v3240_v28, 0 }
 0x672   :  { %v691_v29 = vpop.f32.mrb[12].mxu0 }
 0x673   :  { %v697_v30 = vpack.c.bf16 %v691_v29, %v691_v29  ;;  %v2269_v31 = vpop.f32.mrb[13].mxu0 }
 0x674   :  { %v694_v32 = vpop.f32.mrb[14].mxu0 }
 0x675   :  { %v2270_v33 = vpop.f32.mrb[15].mxu0  ;;  %2274 = vmatmul.mubr.msk.bf16.vlgmr.msra.gmra.mrb[16].mxu0 %vm219_vm1, %v697_v30 }
 0x676   :  { %2278 = vmatpush3.bf16.msra.mxu0 %v766_v34  ;;  %2279 = vmatprep.mubr.msk.bf16.mxu0 %vm2848_vm0, %v2847_v1 }
 0x677   :  { %2303 = vmatprep.subr.bf16.mxu0 %v2847_v1 }
 0x748   :  { %v735_v44 = vpop.f32.mrb[16].mxu0 }
 0x749   :  { %v3276_v45 = vpack.c.bf16 %v735_v44, %v735_v44  ;;  %v2275_v46 = vpop.f32.mrb[17].mxu0 }
 0x74a   :  { %v738_v47 = vpop.f32.mrb[18].mxu0 }
 0x74b   :  { %v2276_v48 = vpop.f32.mrb[19].mxu0  ;;  %2280 = vmatmul.mubr.msk.bf16.vlgmr.msra.gmra.mrb[20].mxu0 %vm760_vm14, %v3276_v45  ;;  %v1041_v33 = vsel %vm764_vm13, %v3276_v45, 0 }
 0x74c   :  { %2305 = vmatprep.mubr.msk.bf16.mxu0 %vm2848_vm0, %v2847_v1 }
 0x81e   :  { %v802_v50 = vpop.f32.mrb[20].mxu0 }
 0x81f   :  { %v808_v51 = vpack.c.bf16 %v802_v50, %v802_v50  ;;  %v2281_v52 = vpop.f32.mrb[21].mxu0 }
 0x820   :  { %v805_v53 = vpop.f32.mrb[22].mxu0 }
 0x821   :  { %v2282_v54 = vpop.f32.mrb[23].mxu0  ;;  %2300 = vmatmul.mubr.bf16.vlgmr.msra.gmra.mrb[8].mxu1 %v808_v51 }
 0x822   :  { %2343 = vmatprep.mubr.msk.bf16.mxu1 %vm2848_vm0, %v2847_v1  ;;  %v2467_v54 = vld [vmem:[%s3535_s11] sm:$0xff]  }
 0x823   :  { %2328 = vmatpush3.bf16.msra.mxu1 %v2467_v54 }
 0x824   :  { %2329 = vmatprep.subr.bf16.mxu1 %v2847_v1 }
 0x8f4   :  { %v897_v56 = vpop.f32.mrb[8].mxu1 }
 0x8f5   :  { %v898_v57 = vadd.f32 %v2053_v55, %v897_v56  ;;  %v2301_v60 = vpop.f32.mrb[9].mxu1  ;;  %v2468_v55 = vld [vmem:[%s3535_s11 + $0x8] sm:$0xff]   ;;  %v2469_v56 = vld [vmem:[%s3535_s11 + $0x10] sm:$0xff]  }
 0x8f6   :  { %v900_v4 = vpop.f32.mrb[10].mxu1  ;;  %2330 = vmatpush3.bf16.msra.mxu1 %v2468_v55  ;;  %v2471_v60 = vld [vmem:[%s3535_s11 + $0x20] sm:$0xff]  }
 0x8f7   :  { %v3288_v6 = vmax.f32 %v898_v57, 0.0  ;;  %v2302_v7 = vpop.f32.mrb[11].mxu1  ;;  %2331 = vmatprep.subr.bf16.mxu1 %v2847_v1  ;;  %v2470_v57 = vld [vmem:[%s3535_s11 + $0x18] sm:$0xff]   ;;  %v2472_v4 = vld [vmem:[%s3535_s11 + $0x28] sm:$0xff]  }
 0x8f9   :  { %v912_v8 = vmul.f32 %v2063_v5, %v3288_v6  ;;  %v993_v9 = vpack.c.bf16 %v3288_v6, %v3288_v6  ;;  %v2473_v5 = vld [vmem:[%s3535_s11 + $0x30] sm:$0xff]  }
 0x8fa   :  { %2332 = vmatpush3.bf16.msra.mxu1 %v2469_v56 }
 0x8fb   :  { %913 = vadd.xlane.f32.xlu1 %v912_v8  ;;  %v998_v10 = vsel %vm764_vm13, %v993_v9, 0  ;;  %2333 = vmatprep.subr.bf16.mxu1 %v2847_v1 }
 0x8fc   :  { %2304 = vmatpush3.bf16.msra.mxu0 %v998_v10 }
 0x8fd   :  { %2309 = vmatprep.subr.bf16.mxu0 %v2847_v1 }
 0x8fe   :  { %2334 = vmatpush3.bf16.msra.mxu1 %v2470_v57 }
 0x8ff   :  { %2335 = vmatprep.subr.bf16.mxu1 %v2847_v1 }
 0x902   :  { %2336 = vmatpush3.bf16.msra.mxu1 %v2471_v60 }
 0x903   :  { %2337 = vmatprep.subr.bf16.mxu1 %v2847_v1 }
 0x906   :  { %2338 = vmatpush3.bf16.msra.mxu1 %v2472_v4 }
 0x907   :  { %2339 = vmatprep.subr.bf16.mxu1 %v2847_v1 }
 0x90a   :  { %2340 = vmatpush3.bf16.msra.mxu1 %v2473_v5 }
 0x90b   :  { %2341 = vmatprep.subr.bf16.mxu1 %v2847_v1 }
 0x988   :  { %v914_v12 = vpop.xlane.xlu1 %913 }
 0x989   :  { %v916_v13 = vadd.f32 %v915_v11, %v914_v12  ;;  %v2474_v12 = vld [vmem:[%s3535_s11 + $0x38] sm:$0xff]  }
 0x98a   :  { %2342 = vmatpush3.bf16.msra.mxu1 %v2474_v12 }
 0x98b   :  { %v2064_v14 = vmul.f32 -0.01, %v916_v13  ;;  %2379 = vmatprep.subr.bf16.mxu1 %v2847_v1 }
 0x98d   :  { %v919_v15 = vmul.f32 1.442695, %v2064_v14 }
 0x98f   :  { %2515 = vpow2.f32 %v919_v15 }
 0x999   :  { %v2516_v16 = vpop.eup %2515 }
 0x99a   :  { %v921_v17 = vadd.f32 1.0, %v2516_v16 }
 0x99c   :  { %2517 = vrcp.f32 %v921_v17 }
 0x9a6   :  { %v2518_v18 = vpop.eup %2517 }
 0x9a7   :  { %924 = vxpose.xlu0.b32.start.end [1/1] (short) (narrow) %v2518_v18, 8 }
 0x9d4   :  { %592 = vadd.xlane.f32.xlu0 %v591_v20  ;;  %v2073_v20 = vld [vmem:[#allocation13] ss:$0 sm:$0xff] }
 0xa27   :  { %v940_v21 = vpop.trf.xlu0 }
 0xa28   :  { %vm956_vm7 = vcmp.gt.f32.partialorder %v2518_v18, %v940_v21  ;;  %vm957_vm8 = vcmp.eq.f32.partialorder %v2518_v18, %v940_v21  ;;  %vm961_vm11 = vcmp.eq.f32.partialorder %v940_v21, %v2518_v18  ;;  %vm960_vm15 = vcmp.gt.f32.partialorder %v940_v21, %v2518_v18 }
 0xa29   :  { %vm958_vm9 = vmand %vm957_vm8, %vm554_vm2 }
 0xa2a   :  { %vm959_vm10 = vmor %vm956_vm7, %vm958_vm9  ;;  %vm560_vm7 = vcmp.gt.f32.partialorder %v3205_v0, %v3190_v58 }
 0xa2b   :  { %v2065_v63 = vsel %vm959_vm10, 1.0, %v2847_v1  ;;  %vm962_vm3 = vmand %vm961_vm11, %vm564_vm12  ;;  %vm1150_vm10 = vcmask 1041408   ;;  %vm1146_vm11 = vcmask 31744  }
 0xa2c   :  { %v966_v22 = vsel %vm760_vm14, %v2065_v63, 0.0  ;;  %vm963_vm6 = vmor %vm960_vm15, %vm962_vm3 }
 0xa2d   :  { %v967_v59 = vrot.slane %v966_v22, 4  ;;  %vm566_vm8 = vmand %vm562_vm4, %vm564_vm12  ;;  %v2066_v35 = vsel %vm963_vm6, 1.0, %v2847_v1 }
 0xa2e   :  { %vm568_vm9 = vmor %vm560_vm7, %vm566_vm8  ;;  %v976_v36 = vsel %vm760_vm14, %v2066_v35, 0.0 }
 0xa2f   :  { %v968_v3 = vadd.f32 %v967_v59, %v966_v22  ;;  %v2044_v58 = vsel %vm568_vm9, 1.0, %v2847_v1 }
 0xa30   :  { %v588_v0 = vsel %vm219_vm1, %v2044_v58, 0.0  ;;  %v2476_v58 = vld [vmem:[#allocation15 + $0x8] sm:$0xff]  }
 0xa31   :  { %v969_v23 = vrot.slane %v968_v3, 2 }
 0xa33   :  { %v970_v24 = vadd.f32 %v969_v23, %v968_v3 }
 0xa35   :  { %v971_v2 = vrot.slane %v970_v24, 1 }
 0xa37   :  { %v972_v26 = vadd.f32 %v971_v2, %v970_v24 }
 0xa39   :  { %v2423_v27 = vtrunc.f32 %v972_v26 }
 0xa3b   :  { %v2424_v29 = vcvt.f32.s32 %v2423_v27 }
 0xa3d   :  { %vm980_vm2 = vcmp.eq.s32.totalorder %v2424_v29, %v3196_v61 }
 0xa3e   :  { %v2067_v30 = vsel %vm980_vm2, 1.0, %v2847_v1 }
 0xa3f   :  { %v983_v31 = vpack.c.bf16 %v2067_v30, %v2067_v30  ;;  %v988_v32 = vmul.f32 %v2067_v30, %v940_v21 }
 0xa41   :  { %2306 = vmatmul.mubr.msk.bf16.vlgmr.msra.gmra.mrb[24].mxu0 %vm760_vm14, %v983_v31  ;;  %v990_v34 = vsel %vm989_vm5, %v988_v32, 0.0  ;;  %v995_v37 = vsel %vm760_vm14, %v983_v31, 0 }
 0xa42   :  { %2310 = vmatpush3.bf16.msra.mxu0 %v1041_v33  ;;  %991 = vadd.xlane.f32.xlu1 %v990_v34 }
 0xa43   :  { %2311 = vmatprep.mubr.msk.bf16.mxu0 %vm2848_vm0, %v2847_v1  ;;  %2315 = vmatprep.subr.bf16.mxu0 %v2847_v1 }
 0xa46   :  { %977 = vadd.xlane.f32.xlu1 %v976_v36  ;;  %v2475_v36 = vld [vmem:[#allocation15] sm:$0xff]  }
 0xa49   :  { %2312 = vmatmul.mubr.msk.bf16.vlgmr.msra.gmra.mrb[28].mxu0 %vm760_vm14, %v983_v31 }
 0xa4a   :  { %589 = vadd.xlane.f32.xlu1 %v588_v0  ;;  %2317 = vmatprep.mubr.msk.bf16.mxu0 %vm2848_vm0, %v2847_v1  ;;  %v2477_v0 = vld [vmem:[#allocation15 + $0x10] sm:$0xff]  }
 0xa4b   :  { %2316 = vmatpush3.bf16.xpose.msra.mxu0 %v995_v37  ;;  %v2478_v37 = vld [vmem:[#allocation15 + $0x18] sm:$0xff]  }
 0xa4c   :  { %2321 = vmatprep.subr.bf16.mxu0 %v2847_v1 }
 0xacf   :  { %v992_v42 = vpop.xlane.xlu1 %991 }
 0xad3   :  { %v978_v18 = vpop.xlane.xlu1 %977 }
 0xad4   :  { %v2425_v19 = vtrunc.f32 %v978_v18  ;;  %v2519_v18 = vld [vmem:[%s3559_s23] sm:$0xff]  }
 0xad6   :  { %v2426_v21 = vcvt.f32.s32 %v2425_v19  ;;  %v2484_v19 = vld [vmem:[#allocation18 + $0x8] sm:$0xff]  }
 0xad8   :  { %vm984_vm12 = vcmp.eq.s32.totalorder %v2426_v21, %v3198_v62  ;;  %v2486_v21 = vld [vmem:[#allocation18 + $0x18] sm:$0xff]  }
 0xad9   :  { %v2068_v26 = vsel %vm984_vm12, 1.0, %v2847_v1 }
 0xada   :  { %v987_v29 = vpack.c.bf16 %v2068_v26, %v2068_v26 }
 0xb14   :  { %v1034_v39 = vpop.f32.mrb[24].mxu0 }
 0xb15   :  { %v2307_v40 = vpop.f32.mrb[25].mxu0  ;;  %v1040_v44 = vmul.f32 %v1034_v39, %v992_v42  ;;  %v2479_v39 = vld [vmem:[#allocation15 + $0x20] sm:$0xff]   ;;  %v2482_v42 = vld [vmem:[#allocation15 + $0x38] sm:$0xff]  }
 0xb16   :  { %v1037_v43 = vpop.f32.mrb[26].mxu0  ;;  %v2481_v40 = vld [vmem:[#allocation15 + $0x30] sm:$0xff]  }
 0xb17   :  { %v2308_v46 = vpop.f32.mrb[27].mxu0  ;;  %v1128_v47 = vpack.c.bf16 %v1040_v44, %v1040_v44 }
 0xb19   :  { %v1152_v52 = vsel %vm1150_vm10, %v1128_v47, 0 }
 0xb1c   :  { %v1077_v48 = vpop.f32.mrb[28].mxu0 }
 0xb1d   :  { %v1083_v49 = vpack.c.bf16 %v1077_v48, %v1077_v48  ;;  %v2313_v50 = vpop.f32.mrb[29].mxu0 }
 0xb1e   :  { %v1080_v51 = vpop.f32.mrb[30].mxu0  ;;  %v593_v50 = vpop.xlane.xlu0 %592 }
 0xb1f   :  { %v2314_v53 = vpop.f32.mrb[31].mxu0  ;;  %2318 = vmatmul.mubr.msk.bf16.vlgmr.msra.gmra.mrb[32].mxu0 %vm760_vm14, %v1083_v49  ;;  %v590_v49 = vpop.xlane.xlu1 %589 }
 0xb20   :  { %2322 = vmatpush3.bf16.msra.mxu0 %v1152_v52  ;;  %2323 = vmatprep.mubr.msk.bf16.mxu0 %vm2848_vm0, %v2847_v1  ;;  %v2419_v51 = vtrunc.f32 %v590_v49  ;;  %v2084_v52 = vld [vmem:[#allocation16] ss:$0 sm:$0xff]  ;;  %v2421_v53 = vtrunc.f32 %v593_v50  ;;  %v2499_v49 = vld [vmem:[%s3541_s17 + $0x60] sm:$0xff]  }
 0xb21   :  { %2347 = vmatprep.subr.bf16.mxu0 %v2847_v1  ;;  %v2500_v50 = vld [vmem:[%s3541_s17 + $0x20] sm:$0xff]  }
 0xb22   :  { %v2420_v55 = vcvt.f32.s32 %v2419_v51  ;;  %v2422_v4 = vcvt.f32.s32 %v2421_v53  ;;  %v2501_v51 = vld [vmem:[%s3541_s17 + $0x68] sm:$0xff]   ;;  %v2503_v53 = vld [vmem:[%s3541_s17 + $0x70] sm:$0xff]  }
 0xb24   :  { %vm600_vm15 = vcmp.eq.s32.totalorder %v2420_v55, %v3198_v62  ;;  %vm601_vm3 = vcmp.eq.s32.totalorder %v2422_v4, %v3198_v62  ;;  %v2505_v55 = vld [vmem:[%s3541_s17 + $0x78] sm:$0xff]  }
 0xbf2   :  { %v1121_v7 = vpop.f32.mrb[32].mxu0 }
 0xbf3   :  { %v1127_v8 = vpack.c.bf16 %v1121_v7, %v1121_v7  ;;  %v2319_v9 = vpop.f32.mrb[33].mxu0 }
 0xbf4   :  { %v1124_v10 = vpop.f32.mrb[34].mxu0  ;;  %v2047_v9 = vsel %vm600_vm15, 1.0, %v2847_v1 }
 0xbf5   :  { %v2320_v11 = vpop.f32.mrb[35].mxu0  ;;  %2324 = vmatmul.mubr.msk.bf16.vlgmr.msra.gmra.mrb[36].mxu0 %vm1146_vm11, %v1127_v8 }
 0xbf6   :  { %2349 = vmatprep.mubr.msk.bf16.mxu0 %vm2848_vm0, %v2847_v1  ;;  %v2048_v11 = vsel %vm601_vm3, 1.0, %v2847_v1 }
 0xbf7   :  { %v606_v12 = vpack.c.bf16 %v2048_v11, %v2047_v9 }
 0xcc8   :  { %v1188_v13 = vpop.f32.mrb[36].mxu0 }
 0xcc9   :  { %v1194_v14 = vpack.c.bf16 %v1188_v13, %v1188_v13  ;;  %v2325_v15 = vpop.f32.mrb[37].mxu0 }
 0xcca   :  { %v1191_v16 = vpop.f32.mrb[38].mxu0 }
 0xccb   :  { %v2326_v17 = vpop.f32.mrb[39].mxu0  ;;  %2344 = vmatmul.mubr.bf16.vlgmr.msra.gmra.mrb[12].mxu1 %v1194_v14 }
 0xccc   :  { %2381 = vmatprep.mubr.msk.bf16.mxu1 %vm2848_vm0, %v2847_v1  ;;  %v2483_v17 = vld [vmem:[#allocation18] sm:$0xff]  }
 0xd9e   :  { %v1283_v63 = vpop.f32.mrb[12].mxu1 }
 0xd9f   :  { %v1284_v22 = vadd.f32 %v2073_v20, %v1283_v63  ;;  %v2345_v59 = vpop.f32.mrb[13].mxu1  ;;  %v2485_v20 = vld [vmem:[#allocation18 + $0x10] sm:$0xff]   ;;  %v2487_v63 = vld [vmem:[#allocation18 + $0x20] sm:$0xff]  }
 0xda0   :  { %v1286_v3 = vpop.f32.mrb[14].mxu1  ;;  %v2489_v59 = vld [vmem:[#allocation18 + $0x30] sm:$0xff]  }
 0xda1   :  { %v1289_v23 = vmax.f32 %v1284_v22, 0.0  ;;  %v2346_v24 = vpop.f32.mrb[15].mxu1  ;;  %v2488_v22 = vld [vmem:[#allocation18 + $0x28] sm:$0xff]   ;;  %v2490_v3 = vld [vmem:[#allocation18 + $0x38] sm:$0xff]  }
 0xda3   :  { %v1290_v2 = vpack.c.bf16 %v1289_v23, %v1289_v23 }
 0xda5   :  { %v1295_v27 = vsel %vm1150_vm10, %v1290_v2, 0 }
 0xda6   :  { %2348 = vmatpush3.bf16.msra.mxu0 %v1295_v27 }
 0xda7   :  { %2353 = vmatprep.subr.bf16.mxu0 %v2847_v1 }
 0xda9   :  { %2350 = vmatmul.mubr.msk.bf16.vlgmr.msra.gmra.mrb[40].mxu0 %vm1146_vm11, %v987_v29  ;;  %v2849_v29 = vmov 0  }
 0xdaa   :  { %2355 = vmatprep.mubr.msk.bf16.mxu0 %vm2848_vm0, %v2847_v1 }
 0xe7c   :  { %v1331_v30 = vpop.f32.mrb[40].mxu0 }
 0xe7d   :  { %v1337_v31 = vpack.c.bf16 %v1331_v30, %v1331_v30  ;;  %v2351_v32 = vpop.f32.mrb[41].mxu0  ;;  %v2095_v30 = vld [vmem:[%s3540_s16] ss:$0 sm:$0xff] }
 0xe7e   :  { %v1334_v33 = vpop.f32.mrb[42].mxu0 }
 0xe7f   :  { %v1356_v34 = vsel %vm764_vm13, %v1337_v31, 0  ;;  %v2352_v35 = vpop.f32.mrb[43].mxu0 }
 0xe80   :  { %2354 = vmatpush3.bf16.msra.mxu0 %v1356_v34 }
 0xe81   :  { %2359 = vmatprep.subr.bf16.mxu0 %v2847_v1 }
 0xe83   :  { %2356 = vmatmul.mubr.msk.bf16.vlgmr.msra.gmra.mrb[44].mxu0 %vm760_vm14, %v3276_v45  ;;  %v2480_v45 = vld [vmem:[#allocation15 + $0x28] sm:$0xff]  }
 0xe84   :  { %2360 = vmatpush3.bf16.msra.mxu0 %v2475_v36  ;;  %2375 = vmatprep.mubr.msk.bf16.mxu0 %vm2848_vm0, %v2847_v1 }
 0xe85   :  { %2361 = vmatprep.subr.bf16.mxu0 %v2847_v1 }
 0xe88   :  { %2362 = vmatpush3.bf16.msra.mxu0 %v2476_v58 }
 0xe89   :  { %2363 = vmatprep.subr.bf16.mxu0 %v2847_v1 }
 0xe8c   :  { %2364 = vmatpush3.bf16.msra.mxu0 %v2477_v0 }
 0xe8d   :  { %2365 = vmatprep.subr.bf16.mxu0 %v2847_v1 }
 0xe90   :  { %2366 = vmatpush3.bf16.msra.mxu0 %v2478_v37 }
 0xe91   :  { %2367 = vmatprep.subr.bf16.mxu0 %v2847_v1 }
 0xe94   :  { %2368 = vmatpush3.bf16.msra.mxu0 %v2479_v39  ;;  %v2491_v39 = vld [vmem:[%s3541_s17 + $0x40] sm:$0xff]  }
 0xe95   :  { %2369 = vmatprep.subr.bf16.mxu0 %v2847_v1 }
 0xe98   :  { %2370 = vmatpush3.bf16.msra.mxu0 %v2480_v45 }
 0xe99   :  { %2371 = vmatprep.subr.bf16.mxu0 %v2847_v1 }
 0xe9c   :  { %2372 = vmatpush3.bf16.msra.mxu0 %v2481_v40 }
 0xe9d   :  { %2373 = vmatprep.subr.bf16.mxu0 %v2847_v1 }
 0xea0   :  { %2374 = vmatpush3.bf16.msra.mxu0 %v2482_v42 }
 0xea1   :  { %1703 = vmatprep.subr.bf16.mxu0 %v3167_v25 }
 0xf56   :  { %v1392_v43 = vpop.f32.mrb[44].mxu0 }
 0xf57   :  { %v1398_v44 = vpack.c.bf16 %v1392_v43, %v1392_v43  ;;  %v2357_v46 = vpop.f32.mrb[45].mxu0 }
 0xf58   :  { %v1395_v47 = vpop.f32.mrb[46].mxu0  ;;  %v2496_v46 = vld [vmem:[%s3541_s17 + $0x10] sm:$0xff]  }
 0xf59   :  { %v2358_v48 = vpop.f32.mrb[47].mxu0  ;;  %2376 = vmatmul.mubr.bf16.vlgmr.msra.gmra.mrb[48].mxu0 %v1398_v44  ;;  %v2497_v47 = vld [vmem:[%s3541_s17 + $0x58] sm:$0xff]  }
 0xf5a   :  { %1735 = vmatprep.mubr.bf16.mxu0 %v2849_v29  ;;  %v2498_v48 = vld [vmem:[%s3541_s17 + $0x18] sm:$0xff]  }
0x102c   :  { %v1487_v54 = vpop.f32.mrb[48].mxu0 }
0x102d   :  { %v1488_v56 = vadd.f32 %v2084_v52, %v1487_v54  ;;  %v2377_v57 = vpop.f32.mrb[49].mxu0  ;;  %v2502_v52 = vld [vmem:[%s3541_s17 + $0x28] sm:$0xff]   ;;  %v2504_v54 = vld [vmem:[%s3541_s17 + $0x30] sm:$0xff]  }
0x102e   :  { %v1490_v60 = vpop.f32.mrb[50].mxu0 }
0x102f   :  { %v1493_v5 = vmax.f32 %v1488_v56, 0.0  ;;  %v2378_v7 = vpop.f32.mrb[51].mxu0  ;;  %v2506_v56 = vld [vmem:[%s3541_s17 + $0x38] sm:$0xff]  }
0x1031   :  { %v1494_v25 = vadd.f32 %v1493_v5, %v3288_v6 }
0x1033   :  { %v1495_v8 = vpack.c.bf16 %v1494_v25, %v1494_v25 }
0x1035   :  { %v1500_v10 = vsel %vm764_vm13, %v1495_v8, 0  ;;  %vm1968_vm13 = vcmp.eq.s32.totalorder %v3196_v61, %v3198_v62  ;;  %v2492_v61 = vld [vmem:[%s3541_s17] sm:$0xff]   ;;  %v2495_v62 = vld [vmem:[%s3541_s17 + $0x50] sm:$0xff]  }
0x1036   :  { %2380 = vmatpush3.bf16.msra.mxu1 %v1500_v10 }
0x1037   :  { %2385 = vmatprep.subr.bf16.mxu1 %v2847_v1 }
0x1039   :  { %2382 = vmatmul.mubr.msk.bf16.vlgmr.msra.gmra.mrb[16].mxu1 %vm760_vm14, %v606_v12 }
0x103a   :  { %2387 = vmatprep.mubr.msk.bf16.mxu1 %vm2848_vm0, %v2847_v1 }
0x110c   :  { %v1536_v13 = vpop.f32.mrb[16].mxu1 }
0x110d   :  { %v2383_v6 = vpop.f32.mrb[17].mxu1 }
0x110e   :  { %v1539_v14 = vpop.f32.mrb[18].mxu1 }
0x110f   :  { %v1543_v15 = vpack.c.bf16 %v1539_v14, %v1536_v13  ;;  %v2384_v16 = vpop.f32.mrb[19].mxu1 }
0x1111   :  { %2386 = vmatpush3.bf16.msra.mxu1 %v1543_v15 }
0x1112   :  { %2391 = vmatprep.subr.bf16.mxu1 %v2847_v1 }
0x1114   :  { %2388 = vmatmul.mubr.msk.bf16.vlgmr.msra.gmra.mrb[20].mxu1 %vm219_vm1, %v2519_v18 }
0x1115   :  { %2392 = vmatpush3.bf16.msra.mxu1 %v2483_v17  ;;  %2407 = vmatprep.mubr.msk.bf16.mxu1 %vm2848_vm0, %v2847_v1 }
0x1116   :  { %2393 = vmatprep.subr.bf16.mxu1 %v2847_v1 }
0x1119   :  { %2394 = vmatpush3.bf16.msra.mxu1 %v2484_v19 }
0x111a   :  { %2395 = vmatprep.subr.bf16.mxu1 %v2847_v1 }
0x111d   :  { %2396 = vmatpush3.bf16.msra.mxu1 %v2485_v20 }
0x111e   :  { %2397 = vmatprep.subr.bf16.mxu1 %v2847_v1 }
0x1121   :  { %2398 = vmatpush3.bf16.msra.mxu1 %v2486_v21 }
0x1122   :  { %2399 = vmatprep.subr.bf16.mxu1 %v2847_v1 }
0x1125   :  { %2400 = vmatpush3.bf16.msra.mxu1 %v2487_v63 }
0x1126   :  { %2401 = vmatprep.subr.bf16.mxu1 %v2847_v1 }
0x1129   :  { %2402 = vmatpush3.bf16.msra.mxu1 %v2488_v22 }
0x112a   :  { %2403 = vmatprep.subr.bf16.mxu1 %v2847_v1 }
0x112d   :  { %2404 = vmatpush3.bf16.msra.mxu1 %v2489_v59 }
0x112e   :  { %2405 = vmatprep.subr.bf16.mxu1 %v2847_v1 }
0x1131   :  { %2406 = vmatpush3.bf16.msra.mxu1 %v2490_v3 }
0x1132   :  { %2411 = vmatprep.subr.bf16.mxu1 %v2847_v1 }
0x11e7   :  { %v1595_v23 = vpop.f32.mrb[20].mxu1 }
0x11e8   :  { %v2389_v24 = vpop.f32.mrb[21].mxu1 }
0x11e9   :  { %v1598_v2 = vpop.f32.mrb[22].mxu1 }
0x11ea   :  { %v1602_v26 = vpack.c.bf16 %v1598_v2, %v1595_v23  ;;  %v2390_v27 = vpop.f32.mrb[23].mxu1 }
0x11ec   :  { %2408 = vmatmul.mubr.bf16.vlgmr.msra.gmra.mrb[24].mxu1 %v1602_v26 }
0x11ed   :  { %2412 = vmatpush3.bf16.xpose.msra.mxu1 %v3240_v28  ;;  %2413 = vmatprep.mubr.msk.bf16.mxu1 %vm2848_vm0, %v2847_v1 }
0x11f4   :  { %2414 = vmatmul.mubr.bf16.vlgmr.msra.gmra.mrb[28].mxu1 %v3240_v28 }
0x12bf   :  { %v1691_v31 = vpop.f32.mrb[24].mxu1 }
0x12c0   :  { %v1692_v32 = vadd.f32 %v2095_v30, %v1691_v31  ;;  %v2409_v33 = vpop.f32.mrb[25].mxu1 }
0x12c1   :  { %v1694_v34 = vpop.f32.mrb[26].mxu1 }
0x12c2   :  { %v1698_v35 = vmax.f32 %v1692_v32, 0.0  ;;  %v1695_v36 = vadd.f32 %v2095_v30, %v1694_v34  ;;  %v2410_v58 = vpop.f32.mrb[27].mxu1 }
0x12c4   :  { %v1699_v0 = vmax.f32 %v1695_v36, 0.0  ;;  %v1700_v1 = vadd.f32 %v1698_v35, %v3181_v38  ;;  %v2493_v38 = vld [vmem:[%s3541_s17 + $0x48] sm:$0xff]  }
0x12c6   :  { %v1701_v28 = vadd.f32 %v1699_v0, %v3183_v41  ;;  %v2494_v41 = vld [vmem:[%s3541_s17 + $0x8] sm:$0xff]  }
0x12c7   :  { %v1962_v37 = vpop.f32.mrb[28].mxu1 }
0x12c8   :  { %v1702_v45 = vpack.c.bf16 %v1701_v28, %v1700_v1  ;;  %v1969_v40 = vsel %vm1968_vm13, 1.0, %v1962_v37  ;;  %v2415_v42 = vpop.f32.mrb[29].mxu1 }
0x12c9   :  { %1970 = vst.msk [vmem:[#allocation24] sm:$0xff] %vm760_vm14, %v1969_v40  ;;  %v1965_v43 = vpop.f32.mrb[30].mxu1 }
0x12ca   :  { %1704 = vmatpush1.bf16.msra.mxu0 %v1702_v45  ;;  %v2416_v44 = vpop.f32.mrb[31].mxu1 }
0x12cb   :  { %2197 = vmatprep.subr.bf16.mxu0 %v2491_v39 }
0x12cd   :  { %2104 = vmatmul.mubr.msk.bf16.vlgmr.msra.gmra.mrb[52].mxu0 %vm219_vm1, %v2519_v18 }
0x12ce   :  { %2198 = vmatpush3.bf16.msra.mxu0 %v2492_v61 }
0x12cf   :  { %2199 = vmatprep.subr.bf16.mxu0 %v2493_v38 }
0x12d2   :  { %2200 = vmatpush3.bf16.msra.mxu0 %v2494_v41 }
0x12d3   :  { %2201 = vmatprep.subr.bf16.mxu0 %v2495_v62 }
0x12d6   :  { %2202 = vmatpush3.bf16.msra.mxu0 %v2496_v46 }
0x12d7   :  { %2203 = vmatprep.subr.bf16.mxu0 %v2497_v47 }
0x12da   :  { %2204 = vmatpush3.bf16.msra.mxu0 %v2498_v48 }
0x12db   :  { %2205 = vmatprep.subr.bf16.mxu0 %v2499_v49 }
0x12de   :  { %2206 = vmatpush3.bf16.msra.mxu0 %v2500_v50 }
0x12df   :  { %2207 = vmatprep.subr.bf16.mxu0 %v2501_v51 }
0x12e2   :  { %2208 = vmatpush3.bf16.msra.mxu0 %v2502_v52 }
0x12e3   :  { %2209 = vmatprep.subr.bf16.mxu0 %v2503_v53 }
0x12e6   :  { %2210 = vmatpush3.bf16.msra.mxu0 %v2504_v54 }
0x12e7   :  { %2211 = vmatprep.subr.bf16.mxu0 %v2505_v55 }
0x12ea   :  { %2212 = vmatpush3.bf16.msra.mxu0 %v2506_v56 }
0x13a0   :  { %v1737_v57 = vpop.f32.mrb[52].mxu0 }
0x13a1   :  { %v1739_v60 = vpop.f32.mrb[53].mxu0 }
0x13a2   :  { %v1741_v4 = vpop.f32.mrb[54].mxu0 }
0x13a3   :  { %v1746_v5 = vpack.c.bf16 %v1741_v4, %v1737_v57  ;;  %v1743_v7 = vpop.f32.mrb[55].mxu0 }
0x13a4   :  { %v1747_v25 = vpack.c.bf16 %v1743_v7, %v1739_v60 }
0x13a6   :  { %1915 = vmatprep.mubr.bf16.mxu0 %v1747_v25 }
0x13a7   :  { %1916 = vmatmul.mubr.bf16.vlgmr.msra.gmra.mrb[56].mxu0 %v1746_v5 }
0x13a8   :  { %2761 = shalt.err (!%p2758_p3)
}
0x13a9   :  { %s2762_s14 = scalar_lea.hbm %s3544_s20, 256 }
0x13aa   :  { %p2763_p4 = scmp.ne.s32.totalorder %s3544_s20, %s2762_s14  ;;  %p2766_p5 = scmp.lt.u32.totalorder %s2762_s14, %s3544_s20 }
0x13ac   :  { %p2768_p6 = pnand %p2766_p5, %p2763_p4 }
0x13ae   :  { %2771 = shalt.err (!%p2768_p6)
}
0x13af   :  { %s2851_s18 = smov 128   ;;  %s2852_s27 = smov 8  }
0x13b0   :  { %1994 = dma.vmem_to_hbm [thread:$0]  %s1989_s7, 256, %s3544_s20, [#allocation23], %s2851_s18, %s2851_s18, %s2852_s27  }
0x13b1   :  { %s2853_s2 = smov [#allocation24]  }
0x13b2   :  { %s2001_s13 = sshll.u32 %s2853_s2, 4  ;;  %s2002_s13 = int_to_ptr.vmem [resolvable:$true] %s2001_s13 }
0x13b3   :  { %s2772_s22 = scalar_lea.vmem %s2002_s13, 128  ;;  %p2777_p8 = scmp.lt.s32.totalorder %s2002_s13, %s2002_s13 }
0x13b4   :  { %p2773_p7 = scmp.ne.s32.totalorder %s2002_s13, %s2772_s22  ;;  %p2778_p9 = scmp.lt.s32.totalorder %s2772_s22, %s2772_s22 }
0x13b6   :  { %p2779_p10 = por %p2778_p9, %p2777_p8 }
0x13b8   :  { %p2780_p11 = pnand %p2779_p10, %p2773_p7 }
0x13ba   :  { %2783 = shalt.err (!%p2780_p11)
}
0x13bb   :  { %s2784_s11 = scalar_lea.hbm %s3545_s21, 128 }
0x13bc   :  { %p2785_p12 = scmp.ne.s32.totalorder %s3545_s21, %s2784_s11  ;;  %p2788_p13 = scmp.lt.u32.totalorder %s2784_s11, %s3545_s21 }
0x13be   :  { %p2790_p0 = pnand %p2788_p13, %p2785_p12 }
0x13c0   :  { %2793 = shalt.err (!%p2790_p0)
}
0x13c1   :  { %2004 = dma.vmem_to_hbm [thread:$0]  %s2002_s13, 128, %s3545_s21, [#allocation23]   ;;  %v2105_v9 = vld [vmem:[#allocation19] ss:$0 sm:$0xff] }
0x13c2   :  { %s2854_s16 = smov [#allocation21]  }
0x13c3   :  { %s1976_s10 = sshll.u32 %s2854_s16, 4  ;;  %s1977_s10 = int_to_ptr.vmem [resolvable:$true] %s1976_s10 }
0x13c4   :  { %s2794_s4 = scalar_lea.vmem %s1977_s10, 256  ;;  %p2799_p2 = scmp.lt.s32.totalorder %s1977_s10, %s1977_s10 }
0x13c5   :  { %p2795_p1 = scmp.ne.s32.totalorder %s1977_s10, %s2794_s4  ;;  %p2800_p3 = scmp.lt.s32.totalorder %s2794_s4, %s2794_s4 }
0x13c7   :  { %p2801_p4 = por %p2800_p3, %p2799_p2 }
0x13c9   :  { %p2802_p5 = pnand %p2801_p4, %p2795_p1 }
0x147a   :  { %v2213_v8 = vpop.f32.mrb[56].mxu0 }
0x147b   :  { %v2214_v10 = vpop.f32.mrb[57].mxu0 }
0x147c   :  { %v2215_v11 = vadd.f32 %v2214_v10, %v2213_v8  ;;  %v2216_v12 = vpop.f32.mrb[58].mxu0 }
0x147d   :  { %v2217_v13 = vpop.f32.mrb[59].mxu0 }
0x147e   :  { %v1918_v6 = vadd.f32 %v2215_v11, %v2105_v9  ;;  %v2218_v14 = vadd.f32 %v2217_v13, %v2216_v12 }
0x1480   :  { %v1924_v15 = vmax.f32 %v1918_v6, 0.0  ;;  %v1921_v16 = vadd.f32 %v2218_v14, %v2105_v9 }
0x1482   :  { %1926 = vst.msk [vmem:[#allocation21] sm:$0xff] %vm219_vm1, %v1924_v15  ;;  %v1925_v17 = vmax.f32 %v1921_v16, 0.0 }
0x1484   :  { %1927 = vst.msk [vmem:[#allocation21 + $0x8] sm:$0xff] %vm219_vm1, %v1925_v17 }
0x1485   :  { %2805 = shalt.err (!%p2802_p5)
}
0x1486   :  { %s2806_s7 = scalar_lea.hbm %s3543_s19, 256 }
0x1487   :  { %p2807_p6 = scmp.ne.s32.totalorder %s3543_s19, %s2806_s7  ;;  %p2810_p7 = scmp.lt.u32.totalorder %s2806_s7, %s3543_s19 }
0x1489   :  { %p2812_p8 = pnand %p2810_p7, %p2807_p6 }
0x148b   :  { %2815 = shalt.err (!%p2812_p8)
}
0x148c   :  { %1982 = dma.vmem_to_hbm [thread:$0]  %s1977_s10, 256, %s3543_s19, [#allocation4], %s2851_s18, %s2851_s18, %s2852_s27  }
0x148d   :  { %2830 = dma.done.wait [#allocation4], 256  }
0x148e   :  { %2831 = vsyncadd [#allocation4], 4294967040 }
0x148f   :  { %2832 = dma.done.wait [#allocation23], 384  }
0x1490   :  { %2833 = vsyncadd [#allocation23], 4294966912 }
0x1491   :  { %2014 = vsyncpa [#allocation3], 1 }
0x1492   :  { %2015 = vsyncpa [#allocation7], 1 }
0x1493   :  { %2016 = vsyncpa [#allocation10], 1 }
0x1494   :  { %2017 = vsyncpa [#allocation14], 1 }
0x1495   :  { %2018 = vsyncpa [#allocation17], 1 }
0x1496   :  { %2019 = vsyncpa [#allocation20], 1 }
0x1497   :  { %2020 = vsyncpa [#allocation4], 1 }
0x1498   :  { %2021 = vsyncpa [#allocation23], 1 }
0x1499   :  { %2022 = vsyncpa [#allocation5], 1 }

</bundles_post_ra>
